<compile_context>
chip_gen: v5e
topology: v5e:2x2
jax: 0.10.0
libtpu: 0.0.40
codegen_flags: <defaults>
</compile_context>

<pallas_src>
import jax
import jax.numpy as jnp
from jax.experimental import pallas as pl


# ----------------------------------------------------------------------------
# Fused kernel: L LSTM layers over T steps + MLP head in one invocation.
# ----------------------------------------------------------------------------
def _fused_rnn_kernel(x_ref, h0_ref, c0_ref, *refs):
    out_ref, hT_ref, cT_ref = refs[-3:]
    w_refs = refs[:-3]

    B, T, _ = x_ref.shape
    L, _, H = h0_ref.shape
    w1_ref, b1_ref, w2t_ref, b2_ref = w_refs[3 * L: 3 * L + 4]

    # Time-major (T*B, I) stack of the inputs for layer 0, assembled once from
    # the VMEM-resident x block (no HBM traffic, no wrapper-side transpose).
    layer_in = jnp.concatenate([x_ref[:, t, :] for t in range(T)], axis=0)

    h = None
    for l in range(L):
        w_ih = w_refs[3 * l + 0][...]          # (I_l, 4H)
        w_hh = w_refs[3 * l + 1][...]          # (H, 4H)
        bias = w_refs[3 * l + 2][...]          # (1, 4H)

        # Hoisted input projection for ALL time steps (one MXU pass per layer),
        # with the bias folded in once instead of broadcast every step.
        gx = jnp.dot(layer_in, w_ih,
                     preferred_element_type=jnp.float32) + bias    # (T*B, 4H)

        h = h0_ref[l]                          # (B, H)
        c = c0_ref[l]                          # (B, H)
        hs = []
        for t in range(T):                     # statically unrolled recurrence
            gates = gx[t * B:(t + 1) * B, :] + jnp.dot(
                h, w_hh, preferred_element_type=jnp.float32)       # (B, 4H)
            i_g = jax.nn.sigmoid(gates[:, 0 * H:1 * H])
            f_g = jax.nn.sigmoid(gates[:, 1 * H:2 * H])
            g_g = jnp.tanh(gates[:, 2 * H:3 * H])
            o_g = jax.nn.sigmoid(gates[:, 3 * H:4 * H])
            c = f_g * c + i_g * g_g
            h = o_g * jnp.tanh(c)
            hs.append(h)

        hT_ref[l] = h
        cT_ref[l] = c
        layer_in = jnp.concatenate(hs, axis=0)  # (T*B, H): feeds the next layer

    # Fused MLP head on h of the last layer: Linear -> tanh -> Linear.
    a = jnp.tanh(jnp.dot(h, w1_ref[...],
                         preferred_element_type=jnp.float32) + b1_ref[...])
    # TODO(synk): F.dropout with p>0 would need pltpu.prng_* masking; the
    # module is configured with dropout_rate=0.0 so it is the identity here.
    out_ref[...] = (jnp.sum(a * w2t_ref[...], axis=-1, keepdims=True)
                    + b2_ref[...])


# ----------------------------------------------------------------------------
# Wrapper: mirrors RNNPredictor.forward.
# ----------------------------------------------------------------------------
def rnn_predictor_forward(x, hidden, params):
    """x: (B, T, I) batch_first; hidden = (h0, c0) each (L, B, H)."""
    h0, c0 = hidden
    L, B, H = h0.shape
    _, T, I = x.shape
    N = params["w1"].shape[-1]

    lstm_inputs, lstm_specs = [], []
    for (w_ih, w_hh, b) in params["lstm"]:
        in_dim = w_ih.shape[0]
        lstm_inputs += [w_ih, w_hh, b]
        lstm_specs += [
            pl.BlockSpec((in_dim, 4 * H), lambda: (0, 0)),
            pl.BlockSpec((H, 4 * H), lambda: (0, 0)),
            pl.BlockSpec((1, 4 * H), lambda: (0, 0)),
        ]

    w2t = jnp.transpose(params["w2"])            # (1, N) row for VPU reduction

    out, hT, cT = pl.pallas_call(
        _fused_rnn_kernel,
        in_specs=[
            pl.BlockSpec((B, T, I), lambda: (0, 0, 0)),     # x (batch_first)
            pl.BlockSpec((L, B, H), lambda: (0, 0, 0)),     # h0
            pl.BlockSpec((L, B, H), lambda: (0, 0, 0)),     # c0
            *lstm_specs,                                     # per-layer weights
            pl.BlockSpec((H, N), lambda: (0, 0)),            # W1
            pl.BlockSpec((1, N), lambda: (0, 0)),            # b1
            pl.BlockSpec((1, N), lambda: (0, 0)),            # W2^T
            pl.BlockSpec((1, 1), lambda: (0, 0)),            # b2
        ],
        out_specs=(
            pl.BlockSpec((B, 1), lambda: (0, 0)),            # prediction
            pl.BlockSpec((L, B, H), lambda: (0, 0, 0)),      # h_T (all layers)
            pl.BlockSpec((L, B, H), lambda: (0, 0, 0)),      # c_T (all layers)
        ),
        out_shape=(
            jax.ShapeDtypeStruct((B, 1), jnp.float32),
            jax.ShapeDtypeStruct((L, B, H), jnp.float32),
            jax.ShapeDtypeStruct((L, B, H), jnp.float32),
        ),
    )(x, h0, c0, *lstm_inputs, params["w1"], params["b1"], w2t, params["b2"])
    return out, (hT, cT)


# ----------------------------------------------------------------------------
# Pure-JAX reference (for correctness check).
# ----------------------------------------------------------------------------
def reference_forward(x, hidden, params):
    h0, c0 = hidden
    L = h0.shape[0]
    layer_in = jnp.transpose(x, (1, 0, 2))               # (T, B, I)
    hT_list, cT_list = [], []
    for l in range(L):
        w_ih, w_hh, b = params["lstm"][l]

        def step(carry, x_t, w_ih=w_ih, w_hh=w_hh, b=b):
            h, c = carry
            gates = x_t @ w_ih + h @ w_hh + b
            i, f, g, o = jnp.split(gates, 4, axis=-1)
            c = jax.nn.sigmoid(f) * c + jax.nn.sigmoid(i) * jnp.tanh(g)
            h = jax.nn.sigmoid(o) * jnp.tanh(c)
            return (h, c), h

        (hT, cT), hs = jax.lax.scan(step, (h0[l], c0[l]), layer_in)
        hT_list.append(hT)
        cT_list.append(cT)
        layer_in = hs
    a = jnp.tanh(hT_list[-1] @ params["w1"] + params["b1"])
    out = a @ params["w2"] + params["b2"]
    return out, (jnp.stack(hT_list, axis=0), jnp.stack(cT_list, axis=0))


def make_params(key, size_of_oh, units_of_rnn, layers_of_rnn, units_of_nn):
    scale = 1.0 / jnp.sqrt(units_of_rnn)
    keys = jax.random.split(key, 4 * layers_of_rnn + 4)
    lstm = []
    k = 0
    for l in range(layers_of_rnn):
        in_dim = size_of_oh if l == 0 else units_of_rnn
        w_ih = jax.random.uniform(keys[k], (in_dim, 4 * units_of_rnn),
                                  jnp.float32, -scale, scale); k += 1
        w_hh = jax.random.uniform(keys[k], (units_of_rnn, 4 * units_of_rnn),
                                  jnp.float32, -scale, scale); k += 1
        b_ih = jax.random.uniform(keys[k], (1, 4 * units_of_rnn),
                                  jnp.float32, -scale, scale); k += 1
        b_hh = jax.random.uniform(keys[k], (1, 4 * units_of_rnn),
                                  jnp.float32, -scale, scale); k += 1
        lstm.append((w_ih, w_hh, b_ih + b_hh))           # fold the two biases
    w1 = jax.random.uniform(keys[k], (units_of_rnn, units_of_nn),
                            jnp.float32, -scale, scale); k += 1
    b1 = jax.random.uniform(keys[k], (1, units_of_nn),
                            jnp.float32, -scale, scale); k += 1
    w2 = jax.random.uniform(keys[k], (units_of_nn, 1),
                            jnp.float32, -scale, scale); k += 1
    b2 = jax.random.uniform(keys[k], (1, 1), jnp.float32, -scale, scale)
    return {"lstm": lstm, "w1": w1, "b1": b1, "w2": w2, "b2": b2}


if __name__ == "__main__":
    # Module args: size_of_oh=16, units_of_rnn=32, layers_of_rnn=2,
    # units_of_nn=32, dropout_rate=0.0, activation='tanh'
    B, T, I, H, L, N = 8, 8, 16, 32, 2, 32

    key = jax.random.PRNGKey(0)
    kx, kp = jax.random.split(key)
    x = jax.random.normal(kx, (B, T, I), jnp.float32)
    params = make_params(kp, I, H, L, N)

    # init_states: zeros of shape (layers, batch, units)
    h0 = jnp.zeros((L, B, H), jnp.float32)
    c0 = jnp.zeros((L, B, H), jnp.float32)

    fwd = jax.jit(rnn_predictor_forward)
    out, (hT, cT) = fwd(x, (h0, c0), params)
    out = jax.block_until_ready(out)
    jax.block_until_ready((hT, cT))

    ref_out, (ref_hT, ref_cT) = reference_forward(x, (h0, c0), params)
    assert out.shape == (B, 1)
    assert hT.shape == (L, B, H) and cT.shape == (L, B, H)
    assert jnp.allclose(out, ref_out, atol=1e-4, rtol=1e-4)
    assert jnp.allclose(hT, ref_hT, atol=1e-4, rtol=1e-4)
    assert jnp.allclose(cT, ref_cT, atol=1e-4, rtol=1e-4)

    print("KERNEL_OK")
</pallas_src>

<mosaic_0001>
module attributes {stable_mosaic.version = 11 : i64} {
  func.func @_fused_rnn_kernel(%arg0: memref<8x8x16xf32, #tpu.memory_space<vmem>>, %arg1: memref<2x8x32xf32, #tpu.memory_space<vmem>>, %arg2: memref<2x8x32xf32, #tpu.memory_space<vmem>>, %arg3: memref<16x128xf32, #tpu.memory_space<vmem>>, %arg4: memref<32x128xf32, #tpu.memory_space<vmem>>, %arg5: memref<1x128xf32, #tpu.memory_space<vmem>>, %arg6: memref<32x128xf32, #tpu.memory_space<vmem>>, %arg7: memref<32x128xf32, #tpu.memory_space<vmem>>, %arg8: memref<1x128xf32, #tpu.memory_space<vmem>>, %arg9: memref<32x32xf32, #tpu.memory_space<vmem>>, %arg10: memref<1x32xf32, #tpu.memory_space<vmem>>, %arg11: memref<1x32xf32, #tpu.memory_space<vmem>>, %arg12: memref<1x1xf32, #tpu.memory_space<vmem>>, %arg13: memref<8x1xf32, #tpu.memory_space<vmem>>, %arg14: memref<2x8x32xf32, #tpu.memory_space<vmem>>, %arg15: memref<2x8x32xf32, #tpu.memory_space<vmem>>) attributes {dimension_semantics = [], scalar_prefetch = 0 : i64, scratch_operands = 0 : i64, tpu.core_type = #tpu.core_type<tc>} {
    %c0 = arith.constant 0 : index
    %c0_0 = arith.constant 0 : index
    %c0_1 = arith.constant 0 : index
    %0 = vector.load %arg0[%c0, %c0_0, %c0_1] : memref<8x8x16xf32, #tpu.memory_space<vmem>>, vector<8x1x16xf32>
    %1 = vector.shape_cast %0 : vector<8x1x16xf32> to vector<8x16xf32>
    %c0_2 = arith.constant 0 : index
    %c1 = arith.constant 1 : index
    %c0_3 = arith.constant 0 : index
    %2 = vector.load %arg0[%c0_2, %c1, %c0_3] : memref<8x8x16xf32, #tpu.memory_space<vmem>>, vector<8x1x16xf32>
    %3 = vector.shape_cast %2 : vector<8x1x16xf32> to vector<8x16xf32>
    %c0_4 = arith.constant 0 : index
    %c2 = arith.constant 2 : index
    %c0_5 = arith.constant 0 : index
    %4 = vector.load %arg0[%c0_4, %c2, %c0_5] : memref<8x8x16xf32, #tpu.memory_space<vmem>>, vector<8x1x16xf32>
    %5 = vector.shape_cast %4 : vector<8x1x16xf32> to vector<8x16xf32>
    %c0_6 = arith.constant 0 : index
    %c3 = arith.constant 3 : index
    %c0_7 = arith.constant 0 : index
    %6 = vector.load %arg0[%c0_6, %c3, %c0_7] : memref<8x8x16xf32, #tpu.memory_space<vmem>>, vector<8x1x16xf32>
    %7 = vector.shape_cast %6 : vector<8x1x16xf32> to vector<8x16xf32>
    %c0_8 = arith.constant 0 : index
    %c4 = arith.constant 4 : index
    %c0_9 = arith.constant 0 : index
    %8 = vector.load %arg0[%c0_8, %c4, %c0_9] : memref<8x8x16xf32, #tpu.memory_space<vmem>>, vector<8x1x16xf32>
    %9 = vector.shape_cast %8 : vector<8x1x16xf32> to vector<8x16xf32>
    %c0_10 = arith.constant 0 : index
    %c5 = arith.constant 5 : index
    %c0_11 = arith.constant 0 : index
    %10 = vector.load %arg0[%c0_10, %c5, %c0_11] : memref<8x8x16xf32, #tpu.memory_space<vmem>>, vector<8x1x16xf32>
    %11 = vector.shape_cast %10 : vector<8x1x16xf32> to vector<8x16xf32>
    %c0_12 = arith.constant 0 : index
    %c6 = arith.constant 6 : index
    %c0_13 = arith.constant 0 : index
    %12 = vector.load %arg0[%c0_12, %c6, %c0_13] : memref<8x8x16xf32, #tpu.memory_space<vmem>>, vector<8x1x16xf32>
    %13 = vector.shape_cast %12 : vector<8x1x16xf32> to vector<8x16xf32>
    %c0_14 = arith.constant 0 : index
    %c7 = arith.constant 7 : index
    %c0_15 = arith.constant 0 : index
    %14 = vector.load %arg0[%c0_14, %c7, %c0_15] : memref<8x8x16xf32, #tpu.memory_space<vmem>>, vector<8x1x16xf32>
    %15 = vector.shape_cast %14 : vector<8x1x16xf32> to vector<8x16xf32>
    %16 = tpu.concatenate %1, %3, %5, %7, %9, %11, %13, %15 in 0 : vector<8x16xf32>, vector<8x16xf32>, vector<8x16xf32>, vector<8x16xf32>, vector<8x16xf32>, vector<8x16xf32>, vector<8x16xf32>, vector<8x16xf32> -> vector<64x16xf32>
    %c0_16 = arith.constant 0 : index
    %c0_17 = arith.constant 0 : index
    %17 = vector.load %arg3[%c0_16, %c0_17] : memref<16x128xf32, #tpu.memory_space<vmem>>, vector<16x128xf32>
    %c0_18 = arith.constant 0 : index
    %c0_19 = arith.constant 0 : index
    %18 = vector.load %arg4[%c0_18, %c0_19] : memref<32x128xf32, #tpu.memory_space<vmem>>, vector<32x128xf32>
    %c0_20 = arith.constant 0 : index
    %c0_21 = arith.constant 0 : index
    %19 = vector.load %arg5[%c0_20, %c0_21] : memref<1x128xf32, #tpu.memory_space<vmem>>, vector<1x128xf32>
    %cst = arith.constant dense<0.000000e+00> : vector<64x128xf32>
    %20 = tpu.matmul %16, %17, %cst {dimension_numbers = #tpu.dot_dimension_numbers<[1], [0], [0], [1], [0, 0, 1, 1], [], []>} : vector<64x16xf32>, vector<16x128xf32>, vector<64x128xf32> -> vector<64x128xf32>
    %21 = vector.broadcast %19 : vector<1x128xf32> to vector<64x128xf32>
    %22 = arith.addf %20, %21 : vector<64x128xf32>
    %c0_22 = arith.constant 0 : index
    %c0_23 = arith.constant 0 : index
    %c0_24 = arith.constant 0 : index
    %23 = vector.load %arg1[%c0_22, %c0_23, %c0_24] : memref<2x8x32xf32, #tpu.memory_space<vmem>>, vector<1x8x32xf32>
    %24 = vector.shape_cast %23 : vector<1x8x32xf32> to vector<8x32xf32>
    %c0_25 = arith.constant 0 : index
    %c0_26 = arith.constant 0 : index
    %c0_27 = arith.constant 0 : index
    %25 = vector.load %arg2[%c0_25, %c0_26, %c0_27] : memref<2x8x32xf32, #tpu.memory_space<vmem>>, vector<1x8x32xf32>
    %26 = vector.shape_cast %25 : vector<1x8x32xf32> to vector<8x32xf32>
    %27 = vector.extract_strided_slice %22 {offsets = [0, 0], sizes = [8, 128], strides = [1, 1]} : vector<64x128xf32> to vector<8x128xf32>
    %cst_28 = arith.constant dense<0.000000e+00> : vector<8x128xf32>
    %28 = tpu.matmul %24, %18, %cst_28 {dimension_numbers = #tpu.dot_dimension_numbers<[1], [0], [0], [1], [0, 0, 1, 1], [], []>} : vector<8x32xf32>, vector<32x128xf32>, vector<8x128xf32> -> vector<8x128xf32>
    %29 = arith.addf %27, %28 : vector<8x128xf32>
    %30 = vector.extract_strided_slice %29 {offsets = [0, 0], sizes = [8, 32], strides = [1, 1]} : vector<8x128xf32> to vector<8x32xf32>
    %31 = arith.negf %30 : vector<8x32xf32>
    %32 = math.exp %31 : vector<8x32xf32>
    %cst_29 = arith.constant 1.000000e+00 : f32
    %33 = vector.broadcast %cst_29 : f32 to vector<8x32xf32>
    %34 = arith.addf %33, %32 : vector<8x32xf32>
    %35 = arith.divf %33, %34 : vector<8x32xf32>
    %36 = vector.extract_strided_slice %29 {offsets = [0, 32], sizes = [8, 32], strides = [1, 1]} : vector<8x128xf32> to vector<8x32xf32>
    %37 = arith.negf %36 : vector<8x32xf32>
    %38 = math.exp %37 : vector<8x32xf32>
    %cst_30 = arith.constant 1.000000e+00 : f32
    %39 = vector.broadcast %cst_30 : f32 to vector<8x32xf32>
    %40 = arith.addf %39, %38 : vector<8x32xf32>
    %41 = arith.divf %39, %40 : vector<8x32xf32>
    %42 = vector.extract_strided_slice %29 {offsets = [0, 64], sizes = [8, 32], strides = [1, 1]} : vector<8x128xf32> to vector<8x32xf32>
    %43 = math.tanh %42 : vector<8x32xf32>
    %44 = vector.extract_strided_slice %29 {offsets = [0, 96], sizes = [8, 32], strides = [1, 1]} : vector<8x128xf32> to vector<8x32xf32>
    %45 = arith.negf %44 : vector<8x32xf32>
    %46 = math.exp %45 : vector<8x32xf32>
    %cst_31 = arith.constant 1.000000e+00 : f32
    %47 = vector.broadcast %cst_31 : f32 to vector<8x32xf32>
    %48 = arith.addf %47, %46 : vector<8x32xf32>
    %49 = arith.divf %47, %48 : vector<8x32xf32>
    %50 = arith.mulf %41, %26 : vector<8x32xf32>
    %51 = arith.mulf %35, %43 : vector<8x32xf32>
    %52 = arith.addf %50, %51 : vector<8x32xf32>
    %53 = math.tanh %52 : vector<8x32xf32>
    %54 = arith.mulf %49, %53 : vector<8x32xf32>
    %55 = vector.extract_strided_slice %22 {offsets = [8, 0], sizes = [8, 128], strides = [1, 1]} : vector<64x128xf32> to vector<8x128xf32>
    %cst_32 = arith.constant dense<0.000000e+00> : vector<8x128xf32>
    %56 = tpu.matmul %54, %18, %cst_32 {dimension_numbers = #tpu.dot_dimension_numbers<[1], [0], [0], [1], [0, 0, 1, 1], [], []>} : vector<8x32xf32>, vector<32x128xf32>, vector<8x128xf32> -> vector<8x128xf32>
    %57 = arith.addf %55, %56 : vector<8x128xf32>
    %58 = vector.extract_strided_slice %57 {offsets = [0, 0], sizes = [8, 32], strides = [1, 1]} : vector<8x128xf32> to vector<8x32xf32>
    %59 = arith.negf %58 : vector<8x32xf32>
    %60 = math.exp %59 : vector<8x32xf32>
    %cst_33 = arith.constant 1.000000e+00 : f32
    %61 = vector.broadcast %cst_33 : f32 to vector<8x32xf32>
    %62 = arith.addf %61, %60 : vector<8x32xf32>
    %63 = arith.divf %61, %62 : vector<8x32xf32>
    %64 = vector.extract_strided_slice %57 {offsets = [0, 32], sizes = [8, 32], strides = [1, 1]} : vector<8x128xf32> to vector<8x32xf32>
    %65 = arith.negf %64 : vector<8x32xf32>
    %66 = math.exp %65 : vector<8x32xf32>
    %cst_34 = arith.constant 1.000000e+00 : f32
    %67 = vector.broadcast %cst_34 : f32 to vector<8x32xf32>
    %68 = arith.addf %67, %66 : vector<8x32xf32>
    %69 = arith.divf %67, %68 : vector<8x32xf32>
    %70 = vector.extract_strided_slice %57 {offsets = [0, 64], sizes = [8, 32], strides = [1, 1]} : vector<8x128xf32> to vector<8x32xf32>
    %71 = math.tanh %70 : vector<8x32xf32>
    %72 = vector.extract_strided_slice %57 {offsets = [0, 96], sizes = [8, 32], strides = [1, 1]} : vector<8x128xf32> to vector<8x32xf32>
    %73 = arith.negf %72 : vector<8x32xf32>
    %74 = math.exp %73 : vector<8x32xf32>
    %cst_35 = arith.constant 1.000000e+00 : f32
    %75 = vector.broadcast %cst_35 : f32 to vector<8x32xf32>
    %76 = arith.addf %75, %74 : vector<8x32xf32>
    %77 = arith.divf %75, %76 : vector<8x32xf32>
    %78 = arith.mulf %69, %52 : vector<8x32xf32>
    %79 = arith.mulf %63, %71 : vector<8x32xf32>
    %80 = arith.addf %78, %79 : vector<8x32xf32>
    %81 = math.tanh %80 : vector<8x32xf32>
    %82 = arith.mulf %77, %81 : vector<8x32xf32>
    %83 = vector.extract_strided_slice %22 {offsets = [16, 0], sizes = [8, 128], strides = [1, 1]} : vector<64x128xf32> to vector<8x128xf32>
    %cst_36 = arith.constant dense<0.000000e+00> : vector<8x128xf32>
    %84 = tpu.matmul %82, %18, %cst_36 {dimension_numbers = #tpu.dot_dimension_numbers<[1], [0], [0], [1], [0, 0, 1, 1], [], []>} : vector<8x32xf32>, vector<32x128xf32>, vector<8x128xf32> -> vector<8x128xf32>
    %85 = arith.addf %83, %84 : vector<8x128xf32>
    %86 = vector.extract_strided_slice %85 {offsets = [0, 0], sizes = [8, 32], strides = [1, 1]} : vector<8x128xf32> to vector<8x32xf32>
    %87 = arith.negf %86 : vector<8x32xf32>
    %88 = math.exp %87 : vector<8x32xf32>
    %cst_37 = arith.constant 1.000000e+00 : f32
    %89 = vector.broadcast %cst_37 : f32 to vector<8x32xf32>
    %90 = arith.addf %89, %88 : vector<8x32xf32>
    %91 = arith.divf %89, %90 : vector<8x32xf32>
    %92 = vector.extract_strided_slice %85 {offsets = [0, 32], sizes = [8, 32], strides = [1, 1]} : vector<8x128xf32> to vector<8x32xf32>
    %93 = arith.negf %92 : vector<8x32xf32>
    %94 = math.exp %93 : vector<8x32xf32>
    %cst_38 = arith.constant 1.000000e+00 : f32
    %95 = vector.broadcast %cst_38 : f32 to vector<8x32xf32>
    %96 = arith.addf %95, %94 : vector<8x32xf32>
    %97 = arith.divf %95, %96 : vector<8x32xf32>
    %98 = vector.extract_strided_slice %85 {offsets = [0, 64], sizes = [8, 32], strides = [1, 1]} : vector<8x128xf32> to vector<8x32xf32>
    %99 = math.tanh %98 : vector<8x32xf32>
    %100 = vector.extract_strided_slice %85 {offsets = [0, 96], sizes = [8, 32], strides = [1, 1]} : vector<8x128xf32> to vector<8x32xf32>
    %101 = arith.negf %100 : vector<8x32xf32>
    %102 = math.exp %101 : vector<8x32xf32>
    %cst_39 = arith.constant 1.000000e+00 : f32
    %103 = vector.broadcast %cst_39 : f32 to vector<8x32xf32>
    %104 = arith.addf %103, %102 : vector<8x32xf32>
    %105 = arith.divf %103, %104 : vector<8x32xf32>
    %106 = arith.mulf %97, %80 : vector<8x32xf32>
    %107 = arith.mulf %91, %99 : vector<8x32xf32>
    %108 = arith.addf %106, %107 : vector<8x32xf32>
    %109 = math.tanh %108 : vector<8x32xf32>
    %110 = arith.mulf %105, %109 : vector<8x32xf32>
    %111 = vector.extract_strided_slice %22 {offsets = [24, 0], sizes = [8, 128], strides = [1, 1]} : vector<64x128xf32> to vector<8x128xf32>
    %cst_40 = arith.constant dense<0.000000e+00> : vector<8x128xf32>
    %112 = tpu.matmul %110, %18, %cst_40 {dimension_numbers = #tpu.dot_dimension_numbers<[1], [0], [0], [1], [0, 0, 1, 1], [], []>} : vector<8x32xf32>, vector<32x128xf32>, vector<8x128xf32> -> vector<8x128xf32>
    %113 = arith.addf %111, %112 : vector<8x128xf32>
    %114 = vector.extract_strided_slice %113 {offsets = [0, 0], sizes = [8, 32], strides = [1, 1]} : vector<8x128xf32> to vector<8x32xf32>
    %115 = arith.negf %114 : vector<8x32xf32>
    %116 = math.exp %115 : vector<8x32xf32>
    %cst_41 = arith.constant 1.000000e+00 : f32
    %117 = vector.broadcast %cst_41 : f32 to vector<8x32xf32>
    %118 = arith.addf %117, %116 : vector<8x32xf32>
    %119 = arith.divf %117, %118 : vector<8x32xf32>
    %120 = vector.extract_strided_slice %113 {offsets = [0, 32], sizes = [8, 32], strides = [1, 1]} : vector<8x128xf32> to vector<8x32xf32>
    %121 = arith.negf %120 : vector<8x32xf32>
    %122 = math.exp %121 : vector<8x32xf32>
    %cst_42 = arith.constant 1.000000e+00 : f32
    %123 = vector.broadcast %cst_42 : f32 to vector<8x32xf32>
    %124 = arith.addf %123, %122 : vector<8x32xf32>
    %125 = arith.divf %123, %124 : vector<8x32xf32>
    %126 = vector.extract_strided_slice %113 {offsets = [0, 64], sizes = [8, 32], strides = [1, 1]} : vector<8x128xf32> to vector<8x32xf32>
    %127 = math.tanh %126 : vector<8x32xf32>
    %128 = vector.extract_strided_slice %113 {offsets = [0, 96], sizes = [8, 32], strides = [1, 1]} : vector<8x128xf32> to vector<8x32xf32>
    %129 = arith.negf %128 : vector<8x32xf32>
    %130 = math.exp %129 : vector<8x32xf32>
    %cst_43 = arith.constant 1.000000e+00 : f32
    %131 = vector.broadcast %cst_43 : f32 to vector<8x32xf32>
    %132 = arith.addf %131, %130 : vector<8x32xf32>
    %133 = arith.divf %131, %132 : vector<8x32xf32>
    %134 = arith.mulf %125, %108 : vector<8x32xf32>
    %135 = arith.mulf %119, %127 : vector<8x32xf32>
    %136 = arith.addf %134, %135 : vector<8x32xf32>
    %137 = math.tanh %136 : vector<8x32xf32>
    %138 = arith.mulf %133, %137 : vector<8x32xf32>
    %139 = vector.extract_strided_slice %22 {offsets = [32, 0], sizes = [8, 128], strides = [1, 1]} : vector<64x128xf32> to vector<8x128xf32>
    %cst_44 = arith.constant dense<0.000000e+00> : vector<8x128xf32>
    %140 = tpu.matmul %138, %18, %cst_44 {dimension_numbers = #tpu.dot_dimension_numbers<[1], [0], [0], [1], [0, 0, 1, 1], [], []>} : vector<8x32xf32>, vector<32x128xf32>, vector<8x128xf32> -> vector<8x128xf32>
    %141 = arith.addf %139, %140 : vector<8x128xf32>
    %142 = vector.extract_strided_slice %141 {offsets = [0, 0], sizes = [8, 32], strides = [1, 1]} : vector<8x128xf32> to vector<8x32xf32>
    %143 = arith.negf %142 : vector<8x32xf32>
    %144 = math.exp %143 : vector<8x32xf32>
    %cst_45 = arith.constant 1.000000e+00 : f32
    %145 = vector.broadcast %cst_45 : f32 to vector<8x32xf32>
    %146 = arith.addf %145, %144 : vector<8x32xf32>
    %147 = arith.divf %145, %146 : vector<8x32xf32>
    %148 = vector.extract_strided_slice %141 {offsets = [0, 32], sizes = [8, 32], strides = [1, 1]} : vector<8x128xf32> to vector<8x32xf32>
    %149 = arith.negf %148 : vector<8x32xf32>
    %150 = math.exp %149 : vector<8x32xf32>
    %cst_46 = arith.constant 1.000000e+00 : f32
    %151 = vector.broadcast %cst_46 : f32 to vector<8x32xf32>
    %152 = arith.addf %151, %150 : vector<8x32xf32>
    %153 = arith.divf %151, %152 : vector<8x32xf32>
    %154 = vector.extract_strided_slice %141 {offsets = [0, 64], sizes = [8, 32], strides = [1, 1]} : vector<8x128xf32> to vector<8x32xf32>
    %155 = math.tanh %154 : vector<8x32xf32>
    %156 = vector.extract_strided_slice %141 {offsets = [0, 96], sizes = [8, 32], strides = [1, 1]} : vector<8x128xf32> to vector<8x32xf32>
    %157 = arith.negf %156 : vector<8x32xf32>
    %158 = math.exp %157 : vector<8x32xf32>
    %cst_47 = arith.constant 1.000000e+00 : f32
    %159 = vector.broadcast %cst_47 : f32 to vector<8x32xf32>
    %160 = arith.addf %159, %158 : vector<8x32xf32>
    %161 = arith.divf %159, %160 : vector<8x32xf32>
    %162 = arith.mulf %153, %136 : vector<8x32xf32>
    %163 = arith.mulf %147, %155 : vector<8x32xf32>
    %164 = arith.addf %162, %163 : vector<8x32xf32>
    %165 = math.tanh %164 : vector<8x32xf32>
    %166 = arith.mulf %161, %165 : vector<8x32xf32>
    %167 = vector.extract_strided_slice %22 {offsets = [40, 0], sizes = [8, 128], strides = [1, 1]} : vector<64x128xf32> to vector<8x128xf32>
    %cst_48 = arith.constant dense<0.000000e+00> : vector<8x128xf32>
    %168 = tpu.matmul %166, %18, %cst_48 {dimension_numbers = #tpu.dot_dimension_numbers<[1], [0], [0], [1], [0, 0, 1, 1], [], []>} : vector<8x32xf32>, vector<32x128xf32>, vector<8x128xf32> -> vector<8x128xf32>
    %169 = arith.addf %167, %168 : vector<8x128xf32>
    %170 = vector.extract_strided_slice %169 {offsets = [0, 0], sizes = [8, 32], strides = [1, 1]} : vector<8x128xf32> to vector<8x32xf32>
    %171 = arith.negf %170 : vector<8x32xf32>
    %172 = math.exp %171 : vector<8x32xf32>
    %cst_49 = arith.constant 1.000000e+00 : f32
    %173 = vector.broadcast %cst_49 : f32 to vector<8x32xf32>
    %174 = arith.addf %173, %172 : vector<8x32xf32>
    %175 = arith.divf %173, %174 : vector<8x32xf32>
    %176 = vector.extract_strided_slice %169 {offsets = [0, 32], sizes = [8, 32], strides = [1, 1]} : vector<8x128xf32> to vector<8x32xf32>
    %177 = arith.negf %176 : vector<8x32xf32>
    %178 = math.exp %177 : vector<8x32xf32>
    %cst_50 = arith.constant 1.000000e+00 : f32
    %179 = vector.broadcast %cst_50 : f32 to vector<8x32xf32>
    %180 = arith.addf %179, %178 : vector<8x32xf32>
    %181 = arith.divf %179, %180 : vector<8x32xf32>
    %182 = vector.extract_strided_slice %169 {offsets = [0, 64], sizes = [8, 32], strides = [1, 1]} : vector<8x128xf32> to vector<8x32xf32>
    %183 = math.tanh %182 : vector<8x32xf32>
    %184 = vector.extract_strided_slice %169 {offsets = [0, 96], sizes = [8, 32], strides = [1, 1]} : vector<8x128xf32> to vector<8x32xf32>
    %185 = arith.negf %184 : vector<8x32xf32>
    %186 = math.exp %185 : vector<8x32xf32>
    %cst_51 = arith.constant 1.000000e+00 : f32
    %187 = vector.broadcast %cst_51 : f32 to vector<8x32xf32>
    %188 = arith.addf %187, %186 : vector<8x32xf32>
    %189 = arith.divf %187, %188 : vector<8x32xf32>
    %190 = arith.mulf %181, %164 : vector<8x32xf32>
    %191 = arith.mulf %175, %183 : vector<8x32xf32>
    %192 = arith.addf %190, %191 : vector<8x32xf32>
    %193 = math.tanh %192 : vector<8x32xf32>
    %194 = arith.mulf %189, %193 : vector<8x32xf32>
    %195 = vector.extract_strided_slice %22 {offsets = [48, 0], sizes = [8, 128], strides = [1, 1]} : vector<64x128xf32> to vector<8x128xf32>
    %cst_52 = arith.constant dense<0.000000e+00> : vector<8x128xf32>
    %196 = tpu.matmul %194, %18, %cst_52 {dimension_numbers = #tpu.dot_dimension_numbers<[1], [0], [0], [1], [0, 0, 1, 1], [], []>} : vector<8x32xf32>, vector<32x128xf32>, vector<8x128xf32> -> vector<8x128xf32>
    %197 = arith.addf %195, %196 : vector<8x128xf32>
    %198 = vector.extract_strided_slice %197 {offsets = [0, 0], sizes = [8, 32], strides = [1, 1]} : vector<8x128xf32> to vector<8x32xf32>
    %199 = arith.negf %198 : vector<8x32xf32>
    %200 = math.exp %199 : vector<8x32xf32>
    %cst_53 = arith.constant 1.000000e+00 : f32
    %201 = vector.broadcast %cst_53 : f32 to vector<8x32xf32>
    %202 = arith.addf %201, %200 : vector<8x32xf32>
    %203 = arith.divf %201, %202 : vector<8x32xf32>
    %204 = vector.extract_strided_slice %197 {offsets = [0, 32], sizes = [8, 32], strides = [1, 1]} : vector<8x128xf32> to vector<8x32xf32>
    %205 = arith.negf %204 : vector<8x32xf32>
    %206 = math.exp %205 : vector<8x32xf32>
    %cst_54 = arith.constant 1.000000e+00 : f32
    %207 = vector.broadcast %cst_54 : f32 to vector<8x32xf32>
    %208 = arith.addf %207, %206 : vector<8x32xf32>
    %209 = arith.divf %207, %208 : vector<8x32xf32>
    %210 = vector.extract_strided_slice %197 {offsets = [0, 64], sizes = [8, 32], strides = [1, 1]} : vector<8x128xf32> to vector<8x32xf32>
    %211 = math.tanh %210 : vector<8x32xf32>
    %212 = vector.extract_strided_slice %197 {offsets = [0, 96], sizes = [8, 32], strides = [1, 1]} : vector<8x128xf32> to vector<8x32xf32>
    %213 = arith.negf %212 : vector<8x32xf32>
    %214 = math.exp %213 : vector<8x32xf32>
    %cst_55 = arith.constant 1.000000e+00 : f32
    %215 = vector.broadcast %cst_55 : f32 to vector<8x32xf32>
    %216 = arith.addf %215, %214 : vector<8x32xf32>
    %217 = arith.divf %215, %216 : vector<8x32xf32>
    %218 = arith.mulf %209, %192 : vector<8x32xf32>
    %219 = arith.mulf %203, %211 : vector<8x32xf32>
    %220 = arith.addf %218, %219 : vector<8x32xf32>
    %221 = math.tanh %220 : vector<8x32xf32>
    %222 = arith.mulf %217, %221 : vector<8x32xf32>
    %223 = vector.extract_strided_slice %22 {offsets = [56, 0], sizes = [8, 128], strides = [1, 1]} : vector<64x128xf32> to vector<8x128xf32>
    %cst_56 = arith.constant dense<0.000000e+00> : vector<8x128xf32>
    %224 = tpu.matmul %222, %18, %cst_56 {dimension_numbers = #tpu.dot_dimension_numbers<[1], [0], [0], [1], [0, 0, 1, 1], [], []>} : vector<8x32xf32>, vector<32x128xf32>, vector<8x128xf32> -> vector<8x128xf32>
    %225 = arith.addf %223, %224 : vector<8x128xf32>
    %226 = vector.extract_strided_slice %225 {offsets = [0, 0], sizes = [8, 32], strides = [1, 1]} : vector<8x128xf32> to vector<8x32xf32>
    %227 = arith.negf %226 : vector<8x32xf32>
    %228 = math.exp %227 : vector<8x32xf32>
    %cst_57 = arith.constant 1.000000e+00 : f32
    %229 = vector.broadcast %cst_57 : f32 to vector<8x32xf32>
    %230 = arith.addf %229, %228 : vector<8x32xf32>
    %231 = arith.divf %229, %230 : vector<8x32xf32>
    %232 = vector.extract_strided_slice %225 {offsets = [0, 32], sizes = [8, 32], strides = [1, 1]} : vector<8x128xf32> to vector<8x32xf32>
    %233 = arith.negf %232 : vector<8x32xf32>
    %234 = math.exp %233 : vector<8x32xf32>
    %cst_58 = arith.constant 1.000000e+00 : f32
    %235 = vector.broadcast %cst_58 : f32 to vector<8x32xf32>
    %236 = arith.addf %235, %234 : vector<8x32xf32>
    %237 = arith.divf %235, %236 : vector<8x32xf32>
    %238 = vector.extract_strided_slice %225 {offsets = [0, 64], sizes = [8, 32], strides = [1, 1]} : vector<8x128xf32> to vector<8x32xf32>
    %239 = math.tanh %238 : vector<8x32xf32>
    %240 = vector.extract_strided_slice %225 {offsets = [0, 96], sizes = [8, 32], strides = [1, 1]} : vector<8x128xf32> to vector<8x32xf32>
    %241 = arith.negf %240 : vector<8x32xf32>
    %242 = math.exp %241 : vector<8x32xf32>
    %cst_59 = arith.constant 1.000000e+00 : f32
    %243 = vector.broadcast %cst_59 : f32 to vector<8x32xf32>
    %244 = arith.addf %243, %242 : vector<8x32xf32>
    %245 = arith.divf %243, %244 : vector<8x32xf32>
    %246 = arith.mulf %237, %220 : vector<8x32xf32>
    %247 = arith.mulf %231, %239 : vector<8x32xf32>
    %248 = arith.addf %246, %247 : vector<8x32xf32>
    %249 = math.tanh %248 : vector<8x32xf32>
    %250 = arith.mulf %245, %249 : vector<8x32xf32>
    %c0_60 = arith.constant 0 : index
    %c0_61 = arith.constant 0 : index
    %c0_62 = arith.constant 0 : index
    %251 = vector.load %arg14[%c0_60, %c0_61, %c0_62] : memref<2x8x32xf32, #tpu.memory_space<vmem>>, vector<1x8x32xf32>
    %252 = vector.shape_cast %251 : vector<1x8x32xf32> to vector<8x32xf32>
    %253 = vector.shape_cast %250 : vector<8x32xf32> to vector<1x8x32xf32>
    tpu.vector_store %arg14[%c0_60, %c0_61, %c0_62], %253 {strides = array<i32>} : memref<2x8x32xf32, #tpu.memory_space<vmem>>, vector<1x8x32xf32>,
    %c0_63 = arith.constant 0 : index
    %c0_64 = arith.constant 0 : index
    %c0_65 = arith.constant 0 : index
    %254 = vector.load %arg15[%c0_63, %c0_64, %c0_65] : memref<2x8x32xf32, #tpu.memory_space<vmem>>, vector<1x8x32xf32>
    %255 = vector.shape_cast %254 : vector<1x8x32xf32> to vector<8x32xf32>
    %256 = vector.shape_cast %248 : vector<8x32xf32> to vector<1x8x32xf32>
    tpu.vector_store %arg15[%c0_63, %c0_64, %c0_65], %256 {strides = array<i32>} : memref<2x8x32xf32, #tpu.memory_space<vmem>>, vector<1x8x32xf32>,
    %257 = tpu.concatenate %54, %82, %110, %138, %166, %194, %222, %250 in 0 : vector<8x32xf32>, vector<8x32xf32>, vector<8x32xf32>, vector<8x32xf32>, vector<8x32xf32>, vector<8x32xf32>, vector<8x32xf32>, vector<8x32xf32> -> vector<64x32xf32>
    %c0_66 = arith.constant 0 : index
    %c0_67 = arith.constant 0 : index
    %258 = vector.load %arg6[%c0_66, %c0_67] : memref<32x128xf32, #tpu.memory_space<vmem>>, vector<32x128xf32>
    %c0_68 = arith.constant 0 : index
    %c0_69 = arith.constant 0 : index
    %259 = vector.load %arg7[%c0_68, %c0_69] : memref<32x128xf32, #tpu.memory_space<vmem>>, vector<32x128xf32>
    %c0_70 = arith.constant 0 : index
    %c0_71 = arith.constant 0 : index
    %260 = vector.load %arg8[%c0_70, %c0_71] : memref<1x128xf32, #tpu.memory_space<vmem>>, vector<1x128xf32>
    %cst_72 = arith.constant dense<0.000000e+00> : vector<64x128xf32>
    %261 = tpu.matmul %257, %258, %cst_72 {dimension_numbers = #tpu.dot_dimension_numbers<[1], [0], [0], [1], [0, 0, 1, 1], [], []>} : vector<64x32xf32>, vector<32x128xf32>, vector<64x128xf32> -> vector<64x128xf32>
    %262 = vector.broadcast %260 : vector<1x128xf32> to vector<64x128xf32>
    %263 = arith.addf %261, %262 : vector<64x128xf32>
    %c1_73 = arith.constant 1 : index
    %c0_74 = arith.constant 0 : index
    %c0_75 = arith.constant 0 : index
    %264 = vector.load %arg1[%c1_73, %c0_74, %c0_75] : memref<2x8x32xf32, #tpu.memory_space<vmem>>, vector<1x8x32xf32>
    %265 = vector.shape_cast %264 : vector<1x8x32xf32> to vector<8x32xf32>
    %c1_76 = arith.constant 1 : index
    %c0_77 = arith.constant 0 : index
    %c0_78 = arith.constant 0 : index
    %266 = vector.load %arg2[%c1_76, %c0_77, %c0_78] : memref<2x8x32xf32, #tpu.memory_space<vmem>>, vector<1x8x32xf32>
    %267 = vector.shape_cast %266 : vector<1x8x32xf32> to vector<8x32xf32>
    %268 = vector.extract_strided_slice %263 {offsets = [0, 0], sizes = [8, 128], strides = [1, 1]} : vector<64x128xf32> to vector<8x128xf32>
    %cst_79 = arith.constant dense<0.000000e+00> : vector<8x128xf32>
    %269 = tpu.matmul %265, %259, %cst_79 {dimension_numbers = #tpu.dot_dimension_numbers<[1], [0], [0], [1], [0, 0, 1, 1], [], []>} : vector<8x32xf32>, vector<32x128xf32>, vector<8x128xf32> -> vector<8x128xf32>
    %270 = arith.addf %268, %269 : vector<8x128xf32>
    %271 = vector.extract_strided_slice %270 {offsets = [0, 0], sizes = [8, 32], strides = [1, 1]} : vector<8x128xf32> to vector<8x32xf32>
    %272 = arith.negf %271 : vector<8x32xf32>
    %273 = math.exp %272 : vector<8x32xf32>
    %cst_80 = arith.constant 1.000000e+00 : f32
    %274 = vector.broadcast %cst_80 : f32 to vector<8x32xf32>
    %275 = arith.addf %274, %273 : vector<8x32xf32>
    %276 = arith.divf %274, %275 : vector<8x32xf32>
    %277 = vector.extract_strided_slice %270 {offsets = [0, 32], sizes = [8, 32], strides = [1, 1]} : vector<8x128xf32> to vector<8x32xf32>
    %278 = arith.negf %277 : vector<8x32xf32>
    %279 = math.exp %278 : vector<8x32xf32>
    %cst_81 = arith.constant 1.000000e+00 : f32
    %280 = vector.broadcast %cst_81 : f32 to vector<8x32xf32>
    %281 = arith.addf %280, %279 : vector<8x32xf32>
    %282 = arith.divf %280, %281 : vector<8x32xf32>
    %283 = vector.extract_strided_slice %270 {offsets = [0, 64], sizes = [8, 32], strides = [1, 1]} : vector<8x128xf32> to vector<8x32xf32>
    %284 = math.tanh %283 : vector<8x32xf32>
    %285 = vector.extract_strided_slice %270 {offsets = [0, 96], sizes = [8, 32], strides = [1, 1]} : vector<8x128xf32> to vector<8x32xf32>
    %286 = arith.negf %285 : vector<8x32xf32>
    %287 = math.exp %286 : vector<8x32xf32>
    %cst_82 = arith.constant 1.000000e+00 : f32
    %288 = vector.broadcast %cst_82 : f32 to vector<8x32xf32>
    %289 = arith.addf %288, %287 : vector<8x32xf32>
    %290 = arith.divf %288, %289 : vector<8x32xf32>
    %291 = arith.mulf %282, %267 : vector<8x32xf32>
    %292 = arith.mulf %276, %284 : vector<8x32xf32>
    %293 = arith.addf %291, %292 : vector<8x32xf32>
    %294 = math.tanh %293 : vector<8x32xf32>
    %295 = arith.mulf %290, %294 : vector<8x32xf32>
    %296 = vector.extract_strided_slice %263 {offsets = [8, 0], sizes = [8, 128], strides = [1, 1]} : vector<64x128xf32> to vector<8x128xf32>
    %cst_83 = arith.constant dense<0.000000e+00> : vector<8x128xf32>
    %297 = tpu.matmul %295, %259, %cst_83 {dimension_numbers = #tpu.dot_dimension_numbers<[1], [0], [0], [1], [0, 0, 1, 1], [], []>} : vector<8x32xf32>, vector<32x128xf32>, vector<8x128xf32> -> vector<8x128xf32>
    %298 = arith.addf %296, %297 : vector<8x128xf32>
    %299 = vector.extract_strided_slice %298 {offsets = [0, 0], sizes = [8, 32], strides = [1, 1]} : vector<8x128xf32> to vector<8x32xf32>
    %300 = arith.negf %299 : vector<8x32xf32>
    %301 = math.exp %300 : vector<8x32xf32>
    %cst_84 = arith.constant 1.000000e+00 : f32
    %302 = vector.broadcast %cst_84 : f32 to vector<8x32xf32>
    %303 = arith.addf %302, %301 : vector<8x32xf32>
    %304 = arith.divf %302, %303 : vector<8x32xf32>
    %305 = vector.extract_strided_slice %298 {offsets = [0, 32], sizes = [8, 32], strides = [1, 1]} : vector<8x128xf32> to vector<8x32xf32>
    %306 = arith.negf %305 : vector<8x32xf32>
    %307 = math.exp %306 : vector<8x32xf32>
    %cst_85 = arith.constant 1.000000e+00 : f32
    %308 = vector.broadcast %cst_85 : f32 to vector<8x32xf32>
    %309 = arith.addf %308, %307 : vector<8x32xf32>
    %310 = arith.divf %308, %309 : vector<8x32xf32>
    %311 = vector.extract_strided_slice %298 {offsets = [0, 64], sizes = [8, 32], strides = [1, 1]} : vector<8x128xf32> to vector<8x32xf32>
    %312 = math.tanh %311 : vector<8x32xf32>
    %313 = vector.extract_strided_slice %298 {offsets = [0, 96], sizes = [8, 32], strides = [1, 1]} : vector<8x128xf32> to vector<8x32xf32>
    %314 = arith.negf %313 : vector<8x32xf32>
    %315 = math.exp %314 : vector<8x32xf32>
    %cst_86 = arith.constant 1.000000e+00 : f32
    %316 = vector.broadcast %cst_86 : f32 to vector<8x32xf32>
    %317 = arith.addf %316, %315 : vector<8x32xf32>
    %318 = arith.divf %316, %317 : vector<8x32xf32>
    %319 = arith.mulf %310, %293 : vector<8x32xf32>
    %320 = arith.mulf %304, %312 : vector<8x32xf32>
    %321 = arith.addf %319, %320 : vector<8x32xf32>
    %322 = math.tanh %321 : vector<8x32xf32>
    %323 = arith.mulf %318, %322 : vector<8x32xf32>
    %324 = vector.extract_strided_slice %263 {offsets = [16, 0], sizes = [8, 128], strides = [1, 1]} : vector<64x128xf32> to vector<8x128xf32>
    %cst_87 = arith.constant dense<0.000000e+00> : vector<8x128xf32>
    %325 = tpu.matmul %323, %259, %cst_87 {dimension_numbers = #tpu.dot_dimension_numbers<[1], [0], [0], [1], [0, 0, 1, 1], [], []>} : vector<8x32xf32>, vector<32x128xf32>, vector<8x128xf32> -> vector<8x128xf32>
    %326 = arith.addf %324, %325 : vector<8x128xf32>
    %327 = vector.extract_strided_slice %326 {offsets = [0, 0], sizes = [8, 32], strides = [1, 1]} : vector<8x128xf32> to vector<8x32xf32>
    %328 = arith.negf %327 : vector<8x32xf32>
    %329 = math.exp %328 : vector<8x32xf32>
    %cst_88 = arith.constant 1.000000e+00 : f32
    %330 = vector.broadcast %cst_88 : f32 to vector<8x32xf32>
    %331 = arith.addf %330, %329 : vector<8x32xf32>
    %332 = arith.divf %330, %331 : vector<8x32xf32>
    %333 = vector.extract_strided_slice %326 {offsets = [0, 32], sizes = [8, 32], strides = [1, 1]} : vector<8x128xf32> to vector<8x32xf32>
    %334 = arith.negf %333 : vector<8x32xf32>
    %335 = math.exp %334 : vector<8x32xf32>
    %cst_89 = arith.constant 1.000000e+00 : f32
    %336 = vector.broadcast %cst_89 : f32 to vector<8x32xf32>
    %337 = arith.addf %336, %335 : vector<8x32xf32>
    %338 = arith.divf %336, %337 : vector<8x32xf32>
    %339 = vector.extract_strided_slice %326 {offsets = [0, 64], sizes = [8, 32], strides = [1, 1]} : vector<8x128xf32> to vector<8x32xf32>
    %340 = math.tanh %339 : vector<8x32xf32>
    %341 = vector.extract_strided_slice %326 {offsets = [0, 96], sizes = [8, 32], strides = [1, 1]} : vector<8x128xf32> to vector<8x32xf32>
    %342 = arith.negf %341 : vector<8x32xf32>
    %343 = math.exp %342 : vector<8x32xf32>
    %cst_90 = arith.constant 1.000000e+00 : f32
    %344 = vector.broadcast %cst_90 : f32 to vector<8x32xf32>
    %345 = arith.addf %344, %343 : vector<8x32xf32>
    %346 = arith.divf %344, %345 : vector<8x32xf32>
    %347 = arith.mulf %338, %321 : vector<8x32xf32>
    %348 = arith.mulf %332, %340 : vector<8x32xf32>
    %349 = arith.addf %347, %348 : vector<8x32xf32>
    %350 = math.tanh %349 : vector<8x32xf32>
    %351 = arith.mulf %346, %350 : vector<8x32xf32>
    %352 = vector.extract_strided_slice %263 {offsets = [24, 0], sizes = [8, 128], strides = [1, 1]} : vector<64x128xf32> to vector<8x128xf32>
    %cst_91 = arith.constant dense<0.000000e+00> : vector<8x128xf32>
    %353 = tpu.matmul %351, %259, %cst_91 {dimension_numbers = #tpu.dot_dimension_numbers<[1], [0], [0], [1], [0, 0, 1, 1], [], []>} : vector<8x32xf32>, vector<32x128xf32>, vector<8x128xf32> -> vector<8x128xf32>
    %354 = arith.addf %352, %353 : vector<8x128xf32>
    %355 = vector.extract_strided_slice %354 {offsets = [0, 0], sizes = [8, 32], strides = [1, 1]} : vector<8x128xf32> to vector<8x32xf32>
    %356 = arith.negf %355 : vector<8x32xf32>
    %357 = math.exp %356 : vector<8x32xf32>
    %cst_92 = arith.constant 1.000000e+00 : f32
    %358 = vector.broadcast %cst_92 : f32 to vector<8x32xf32>
    %359 = arith.addf %358, %357 : vector<8x32xf32>
    %360 = arith.divf %358, %359 : vector<8x32xf32>
    %361 = vector.extract_strided_slice %354 {offsets = [0, 32], sizes = [8, 32], strides = [1, 1]} : vector<8x128xf32> to vector<8x32xf32>
    %362 = arith.negf %361 : vector<8x32xf32>
    %363 = math.exp %362 : vector<8x32xf32>
    %cst_93 = arith.constant 1.000000e+00 : f32
    %364 = vector.broadcast %cst_93 : f32 to vector<8x32xf32>
    %365 = arith.addf %364, %363 : vector<8x32xf32>
    %366 = arith.divf %364, %365 : vector<8x32xf32>
    %367 = vector.extract_strided_slice %354 {offsets = [0, 64], sizes = [8, 32], strides = [1, 1]} : vector<8x128xf32> to vector<8x32xf32>
    %368 = math.tanh %367 : vector<8x32xf32>
    %369 = vector.extract_strided_slice %354 {offsets = [0, 96], sizes = [8, 32], strides = [1, 1]} : vector<8x128xf32> to vector<8x32xf32>
    %370 = arith.negf %369 : vector<8x32xf32>
    %371 = math.exp %370 : vector<8x32xf32>
    %cst_94 = arith.constant 1.000000e+00 : f32
    %372 = vector.broadcast %cst_94 : f32 to vector<8x32xf32>
    %373 = arith.addf %372, %371 : vector<8x32xf32>
    %374 = arith.divf %372, %373 : vector<8x32xf32>
    %375 = arith.mulf %366, %349 : vector<8x32xf32>
    %376 = arith.mulf %360, %368 : vector<8x32xf32>
    %377 = arith.addf %375, %376 : vector<8x32xf32>
    %378 = math.tanh %377 : vector<8x32xf32>
    %379 = arith.mulf %374, %378 : vector<8x32xf32>
    %380 = vector.extract_strided_slice %263 {offsets = [32, 0], sizes = [8, 128], strides = [1, 1]} : vector<64x128xf32> to vector<8x128xf32>
    %cst_95 = arith.constant dense<0.000000e+00> : vector<8x128xf32>
    %381 = tpu.matmul %379, %259, %cst_95 {dimension_numbers = #tpu.dot_dimension_numbers<[1], [0], [0], [1], [0, 0, 1, 1], [], []>} : vector<8x32xf32>, vector<32x128xf32>, vector<8x128xf32> -> vector<8x128xf32>
    %382 = arith.addf %380, %381 : vector<8x128xf32>
    %383 = vector.extract_strided_slice %382 {offsets = [0, 0], sizes = [8, 32], strides = [1, 1]} : vector<8x128xf32> to vector<8x32xf32>
    %384 = arith.negf %383 : vector<8x32xf32>
    %385 = math.exp %384 : vector<8x32xf32>
    %cst_96 = arith.constant 1.000000e+00 : f32
    %386 = vector.broadcast %cst_96 : f32 to vector<8x32xf32>
    %387 = arith.addf %386, %385 : vector<8x32xf32>
    %388 = arith.divf %386, %387 : vector<8x32xf32>
    %389 = vector.extract_strided_slice %382 {offsets = [0, 32], sizes = [8, 32], strides = [1, 1]} : vector<8x128xf32> to vector<8x32xf32>
    %390 = arith.negf %389 : vector<8x32xf32>
    %391 = math.exp %390 : vector<8x32xf32>
    %cst_97 = arith.constant 1.000000e+00 : f32
    %392 = vector.broadcast %cst_97 : f32 to vector<8x32xf32>
    %393 = arith.addf %392, %391 : vector<8x32xf32>
    %394 = arith.divf %392, %393 : vector<8x32xf32>
    %395 = vector.extract_strided_slice %382 {offsets = [0, 64], sizes = [8, 32], strides = [1, 1]} : vector<8x128xf32> to vector<8x32xf32>
    %396 = math.tanh %395 : vector<8x32xf32>
    %397 = vector.extract_strided_slice %382 {offsets = [0, 96], sizes = [8, 32], strides = [1, 1]} : vector<8x128xf32> to vector<8x32xf32>
    %398 = arith.negf %397 : vector<8x32xf32>
    %399 = math.exp %398 : vector<8x32xf32>
    %cst_98 = arith.constant 1.000000e+00 : f32
    %400 = vector.broadcast %cst_98 : f32 to vector<8x32xf32>
    %401 = arith.addf %400, %399 : vector<8x32xf32>
    %402 = arith.divf %400, %401 : vector<8x32xf32>
    %403 = arith.mulf %394, %377 : vector<8x32xf32>
    %404 = arith.mulf %388, %396 : vector<8x32xf32>
    %405 = arith.addf %403, %404 : vector<8x32xf32>
    %406 = math.tanh %405 : vector<8x32xf32>
    %407 = arith.mulf %402, %406 : vector<8x32xf32>
    %408 = vector.extract_strided_slice %263 {offsets = [40, 0], sizes = [8, 128], strides = [1, 1]} : vector<64x128xf32> to vector<8x128xf32>
    %cst_99 = arith.constant dense<0.000000e+00> : vector<8x128xf32>
    %409 = tpu.matmul %407, %259, %cst_99 {dimension_numbers = #tpu.dot_dimension_numbers<[1], [0], [0], [1], [0, 0, 1, 1], [], []>} : vector<8x32xf32>, vector<32x128xf32>, vector<8x128xf32> -> vector<8x128xf32>
    %410 = arith.addf %408, %409 : vector<8x128xf32>
    %411 = vector.extract_strided_slice %410 {offsets = [0, 0], sizes = [8, 32], strides = [1, 1]} : vector<8x128xf32> to vector<8x32xf32>
    %412 = arith.negf %411 : vector<8x32xf32>
    %413 = math.exp %412 : vector<8x32xf32>
    %cst_100 = arith.constant 1.000000e+00 : f32
    %414 = vector.broadcast %cst_100 : f32 to vector<8x32xf32>
    %415 = arith.addf %414, %413 : vector<8x32xf32>
    %416 = arith.divf %414, %415 : vector<8x32xf32>
    %417 = vector.extract_strided_slice %410 {offsets = [0, 32], sizes = [8, 32], strides = [1, 1]} : vector<8x128xf32> to vector<8x32xf32>
    %418 = arith.negf %417 : vector<8x32xf32>
    %419 = math.exp %418 : vector<8x32xf32>
    %cst_101 = arith.constant 1.000000e+00 : f32
    %420 = vector.broadcast %cst_101 : f32 to vector<8x32xf32>
    %421 = arith.addf %420, %419 : vector<8x32xf32>
    %422 = arith.divf %420, %421 : vector<8x32xf32>
    %423 = vector.extract_strided_slice %410 {offsets = [0, 64], sizes = [8, 32], strides = [1, 1]} : vector<8x128xf32> to vector<8x32xf32>
    %424 = math.tanh %423 : vector<8x32xf32>
    %425 = vector.extract_strided_slice %410 {offsets = [0, 96], sizes = [8, 32], strides = [1, 1]} : vector<8x128xf32> to vector<8x32xf32>
    %426 = arith.negf %425 : vector<8x32xf32>
    %427 = math.exp %426 : vector<8x32xf32>
    %cst_102 = arith.constant 1.000000e+00 : f32
    %428 = vector.broadcast %cst_102 : f32 to vector<8x32xf32>
    %429 = arith.addf %428, %427 : vector<8x32xf32>
    %430 = arith.divf %428, %429 : vector<8x32xf32>
    %431 = arith.mulf %422, %405 : vector<8x32xf32>
    %432 = arith.mulf %416, %424 : vector<8x32xf32>
    %433 = arith.addf %431, %432 : vector<8x32xf32>
    %434 = math.tanh %433 : vector<8x32xf32>
    %435 = arith.mulf %430, %434 : vector<8x32xf32>
    %436 = vector.extract_strided_slice %263 {offsets = [48, 0], sizes = [8, 128], strides = [1, 1]} : vector<64x128xf32> to vector<8x128xf32>
    %cst_103 = arith.constant dense<0.000000e+00> : vector<8x128xf32>
    %437 = tpu.matmul %435, %259, %cst_103 {dimension_numbers = #tpu.dot_dimension_numbers<[1], [0], [0], [1], [0, 0, 1, 1], [], []>} : vector<8x32xf32>, vector<32x128xf32>, vector<8x128xf32> -> vector<8x128xf32>
    %438 = arith.addf %436, %437 : vector<8x128xf32>
    %439 = vector.extract_strided_slice %438 {offsets = [0, 0], sizes = [8, 32], strides = [1, 1]} : vector<8x128xf32> to vector<8x32xf32>
    %440 = arith.negf %439 : vector<8x32xf32>
    %441 = math.exp %440 : vector<8x32xf32>
    %cst_104 = arith.constant 1.000000e+00 : f32
    %442 = vector.broadcast %cst_104 : f32 to vector<8x32xf32>
    %443 = arith.addf %442, %441 : vector<8x32xf32>
    %444 = arith.divf %442, %443 : vector<8x32xf32>
    %445 = vector.extract_strided_slice %438 {offsets = [0, 32], sizes = [8, 32], strides = [1, 1]} : vector<8x128xf32> to vector<8x32xf32>
    %446 = arith.negf %445 : vector<8x32xf32>
    %447 = math.exp %446 : vector<8x32xf32>
    %cst_105 = arith.constant 1.000000e+00 : f32
    %448 = vector.broadcast %cst_105 : f32 to vector<8x32xf32>
    %449 = arith.addf %448, %447 : vector<8x32xf32>
    %450 = arith.divf %448, %449 : vector<8x32xf32>
    %451 = vector.extract_strided_slice %438 {offsets = [0, 64], sizes = [8, 32], strides = [1, 1]} : vector<8x128xf32> to vector<8x32xf32>
    %452 = math.tanh %451 : vector<8x32xf32>
    %453 = vector.extract_strided_slice %438 {offsets = [0, 96], sizes = [8, 32], strides = [1, 1]} : vector<8x128xf32> to vector<8x32xf32>
    %454 = arith.negf %453 : vector<8x32xf32>
    %455 = math.exp %454 : vector<8x32xf32>
    %cst_106 = arith.constant 1.000000e+00 : f32
    %456 = vector.broadcast %cst_106 : f32 to vector<8x32xf32>
    %457 = arith.addf %456, %455 : vector<8x32xf32>
    %458 = arith.divf %456, %457 : vector<8x32xf32>
    %459 = arith.mulf %450, %433 : vector<8x32xf32>
    %460 = arith.mulf %444, %452 : vector<8x32xf32>
    %461 = arith.addf %459, %460 : vector<8x32xf32>
    %462 = math.tanh %461 : vector<8x32xf32>
    %463 = arith.mulf %458, %462 : vector<8x32xf32>
    %464 = vector.extract_strided_slice %263 {offsets = [56, 0], sizes = [8, 128], strides = [1, 1]} : vector<64x128xf32> to vector<8x128xf32>
    %cst_107 = arith.constant dense<0.000000e+00> : vector<8x128xf32>
    %465 = tpu.matmul %463, %259, %cst_107 {dimension_numbers = #tpu.dot_dimension_numbers<[1], [0], [0], [1], [0, 0, 1, 1], [], []>} : vector<8x32xf32>, vector<32x128xf32>, vector<8x128xf32> -> vector<8x128xf32>
    %466 = arith.addf %464, %465 : vector<8x128xf32>
    %467 = vector.extract_strided_slice %466 {offsets = [0, 0], sizes = [8, 32], strides = [1, 1]} : vector<8x128xf32> to vector<8x32xf32>
    %468 = arith.negf %467 : vector<8x32xf32>
    %469 = math.exp %468 : vector<8x32xf32>
    %cst_108 = arith.constant 1.000000e+00 : f32
    %470 = vector.broadcast %cst_108 : f32 to vector<8x32xf32>
    %471 = arith.addf %470, %469 : vector<8x32xf32>
    %472 = arith.divf %470, %471 : vector<8x32xf32>
    %473 = vector.extract_strided_slice %466 {offsets = [0, 32], sizes = [8, 32], strides = [1, 1]} : vector<8x128xf32> to vector<8x32xf32>
    %474 = arith.negf %473 : vector<8x32xf32>
    %475 = math.exp %474 : vector<8x32xf32>
    %cst_109 = arith.constant 1.000000e+00 : f32
    %476 = vector.broadcast %cst_109 : f32 to vector<8x32xf32>
    %477 = arith.addf %476, %475 : vector<8x32xf32>
    %478 = arith.divf %476, %477 : vector<8x32xf32>
    %479 = vector.extract_strided_slice %466 {offsets = [0, 64], sizes = [8, 32], strides = [1, 1]} : vector<8x128xf32> to vector<8x32xf32>
    %480 = math.tanh %479 : vector<8x32xf32>
    %481 = vector.extract_strided_slice %466 {offsets = [0, 96], sizes = [8, 32], strides = [1, 1]} : vector<8x128xf32> to vector<8x32xf32>
    %482 = arith.negf %481 : vector<8x32xf32>
    %483 = math.exp %482 : vector<8x32xf32>
    %cst_110 = arith.constant 1.000000e+00 : f32
    %484 = vector.broadcast %cst_110 : f32 to vector<8x32xf32>
    %485 = arith.addf %484, %483 : vector<8x32xf32>
    %486 = arith.divf %484, %485 : vector<8x32xf32>
    %487 = arith.mulf %478, %461 : vector<8x32xf32>
    %488 = arith.mulf %472, %480 : vector<8x32xf32>
    %489 = arith.addf %487, %488 : vector<8x32xf32>
    %490 = math.tanh %489 : vector<8x32xf32>
    %491 = arith.mulf %486, %490 : vector<8x32xf32>
    %c1_111 = arith.constant 1 : index
    %c0_112 = arith.constant 0 : index
    %c0_113 = arith.constant 0 : index
    %492 = vector.load %arg14[%c1_111, %c0_112, %c0_113] : memref<2x8x32xf32, #tpu.memory_space<vmem>>, vector<1x8x32xf32>
    %493 = vector.shape_cast %492 : vector<1x8x32xf32> to vector<8x32xf32>
    %494 = vector.shape_cast %491 : vector<8x32xf32> to vector<1x8x32xf32>
    tpu.vector_store %arg14[%c1_111, %c0_112, %c0_113], %494 {strides = array<i32>} : memref<2x8x32xf32, #tpu.memory_space<vmem>>, vector<1x8x32xf32>,
    %c1_114 = arith.constant 1 : index
    %c0_115 = arith.constant 0 : index
    %c0_116 = arith.constant 0 : index
    %495 = vector.load %arg15[%c1_114, %c0_115, %c0_116] : memref<2x8x32xf32, #tpu.memory_space<vmem>>, vector<1x8x32xf32>
    %496 = vector.shape_cast %495 : vector<1x8x32xf32> to vector<8x32xf32>
    %497 = vector.shape_cast %489 : vector<8x32xf32> to vector<1x8x32xf32>
    tpu.vector_store %arg15[%c1_114, %c0_115, %c0_116], %497 {strides = array<i32>} : memref<2x8x32xf32, #tpu.memory_space<vmem>>, vector<1x8x32xf32>,
    %c0_117 = arith.constant 0 : index
    %c0_118 = arith.constant 0 : index
    %498 = vector.load %arg9[%c0_117, %c0_118] : memref<32x32xf32, #tpu.memory_space<vmem>>, vector<32x32xf32>
    %cst_119 = arith.constant dense<0.000000e+00> : vector<8x32xf32>
    %499 = tpu.matmul %491, %498, %cst_119 {dimension_numbers = #tpu.dot_dimension_numbers<[1], [0], [0], [1], [0, 0, 1, 1], [], []>} : vector<8x32xf32>, vector<32x32xf32>, vector<8x32xf32> -> vector<8x32xf32>
    %c0_120 = arith.constant 0 : index
    %c0_121 = arith.constant 0 : index
    %500 = vector.load %arg10[%c0_120, %c0_121] : memref<1x32xf32, #tpu.memory_space<vmem>>, vector<1x32xf32>
    %501 = vector.broadcast %500 : vector<1x32xf32> to vector<8x32xf32>
    %502 = arith.addf %499, %501 : vector<8x32xf32>
    %503 = math.tanh %502 : vector<8x32xf32>
    %c0_122 = arith.constant 0 : index
    %c0_123 = arith.constant 0 : index
    %504 = vector.load %arg11[%c0_122, %c0_123] : memref<1x32xf32, #tpu.memory_space<vmem>>, vector<1x32xf32>
    %505 = vector.broadcast %504 : vector<1x32xf32> to vector<8x32xf32>
    %506 = arith.mulf %503, %505 : vector<8x32xf32>
    %cst_124 = arith.constant dense<0.000000e+00> : vector<8xf32>
    %507 = vector.multi_reduction <add>, %506, %cst_124 [1] : vector<8x32xf32> to vector<8xf32>
    %508 = vector.shape_cast %507 : vector<8xf32> to vector<8x1xf32>
    %c0_125 = arith.constant 0 : index
    %c0_126 = arith.constant 0 : index
    %509 = vector.load %arg12[%c0_125, %c0_126] : memref<1x1xf32, #tpu.memory_space<vmem>>, vector<1x1xf32>
    %510 = vector.broadcast %509 : vector<1x1xf32> to vector<8x1xf32>
    %511 = arith.addf %508, %510 : vector<8x1xf32>
    %c0_127 = arith.constant 0 : index
    %c0_128 = arith.constant 0 : index
    %512 = vector.load %arg13[%c0_127, %c0_128] : memref<8x1xf32, #tpu.memory_space<vmem>>, vector<8x1xf32>
    tpu.vector_store %arg13[%c0_127, %c0_128], %511 {strides = array<i32>} : memref<8x1xf32, #tpu.memory_space<vmem>>, vector<8x1xf32>,
    return
  }
}

</mosaic_0001>

<bundles_post_ra>
// kernel: rnn_predictor_forward.1
= control target key start
LH: loop header
LB: loop body
LE: loop exit
PB: predicated region body
PF: predicated region fallthrough
CT: control target
= control target key end

     0   :  { %s2609_s0 = inlined_call_operand.hbm [shape: f32[8,8,16], index: 0, kind: input, shape index: {}]   ;;  %s2610_s1 = inlined_call_operand.hbm [shape: f32[2,8,32], index: 1, kind: input, shape index: {}]   ;;  %s2611_s2 = inlined_call_operand.hbm [shape: f32[2,8,32], index: 2, kind: input, shape index: {}]   ;;  %s2612_s3 = inlined_call_operand.hbm [shape: f32[16,128], index: 3, kind: input, shape index: {}]   ;;  %s2613_s4 = inlined_call_operand.hbm [shape: f32[32,128], index: 4, kind: input, shape index: {}]   ;;  %s2614_s5 = inlined_call_operand.vmem [shape: f32[1,128], index: 5, kind: input, shape index: {}]   ;;  %s2615_s6 = inlined_call_operand.hbm [shape: f32[32,128], index: 6, kind: input, shape index: {}]   ;;  %s2616_s7 = inlined_call_operand.hbm [shape: f32[32,128], index: 7, kind: input, shape index: {}]   ;;  %s2617_s8 = inlined_call_operand.vmem [shape: f32[1,128], index: 8, kind: input, shape index: {}]   ;;  %s2618_s9 = inlined_call_operand.hbm [shape: f32[32,32], index: 9, kind: input, shape index: {}]   ;;  %s2619_s10 = inlined_call_operand.vmem [shape: f32[1,32], index: 10, kind: input, shape index: {}]   ;;  %s2620_s11 = inlined_call_operand.vmem [shape: f32[1,32], index: 11, kind: input, shape index: {}]   ;;  %s2621_s12 = inlined_call_operand.<no memory space> [shape: f32[1,1], index: 12, kind: input, shape index: {}]   ;;  %s2622_s13 = inlined_call_operand.vmem [shape: f32[8,1], index: 13, kind: output, shape index: {0}]   ;;  %s2623_s14 = inlined_call_operand.hbm [shape: f32[2,8,32], index: 14, kind: output, shape index: {1}]   ;;  %s2624_s15 = inlined_call_operand.hbm [shape: f32[2,8,32], index: 15, kind: output, shape index: {2}]  }
   0x1   :  { %v21_v0 = vstv %s2621_s12 }
   0x2   :  { %22 = vst [vmem:[#allocation2] sm:$0x1] %v21_v0 }
   0x3   :  { %23 = vsyncpa [#allocation4], 0 }
   0x4   :  { %24 = vsyncpa [#allocation7], 0 }
   0x5   :  { %25 = vsyncpa [#allocation10], 0 }
   0x6   :  { %26 = vsyncpa [#allocation13], 0 }
   0x7   :  { %27 = vsyncpa [#allocation16], 0 }
   0x8   :  { %28 = vsyncpa [#allocation5], 0 }
   0x9   :  { %29 = vsyncpa [#allocation19], 0  ;;  %s47_s22 = sshll.u32 %s2610_s1, 4  ;;  %s2132_s23 = smov [#allocation6]   ;;  %s48_s22 = int_to_ptr.hbm [resolvable:$true] %s47_s22 }
   0xa   :  { %s49_s24 = sshll.u32 %s2132_s23, 4  ;;  %s73_s12 = sshll.u32 %s2612_s3, 4  ;;  %s50_s24 = int_to_ptr.vmem [resolvable:$true] %s49_s24  ;;  %s74_s12 = int_to_ptr.hbm [resolvable:$true] %s73_s12 }
   0xb   :  { %s2133_s27 = smov 128   ;;  %s2134_s28 = smov 8  }
   0xc   :  { %55 = dma.hbm_to_vmem [thread:$0]  %s48_s22, 256, %s50_s24, [#allocation7], %s2133_s27, %s2133_s27, %s2134_s28  }
   0xd   :  { %s2135_s29 = smov [#allocation9]   ;;  %s101_s1 = sshll.u32 %s2615_s6, 4  ;;  %s102_s1 = int_to_ptr.hbm [resolvable:$true] %s101_s1 }
   0xe   :  { %s75_s30 = sshll.u32 %s2135_s29, 4  ;;  %s34_s19 = sshll.u32 %s2609_s0, 4  ;;  %s76_s30 = int_to_ptr.vmem [resolvable:$true] %s75_s30  ;;  %s35_s19 = int_to_ptr.hbm [resolvable:$true] %s34_s19 }
   0xf   :  { %81 = dma.hbm_to_vmem [thread:$0]  %s74_s12, 256, %s76_s30, [#allocation10], %s2133_s27, %s2133_s27, %s2134_s28  }
  0x10   :  { %s2136_s20 = smov [#allocation12]   ;;  %s2137_s22 = smov [#allocation3]  }
  0x11   :  { %s103_s21 = sshll.u32 %s2136_s20, 4  ;;  %s36_s6 = sshll.u32 %s2137_s22, 4  ;;  %s104_s21 = int_to_ptr.vmem [resolvable:$true] %s103_s21  ;;  %s37_s6 = int_to_ptr.vmem [resolvable:$true] %s36_s6 }
  0x12   :  { %109 = dma.hbm_to_vmem [thread:$0]  %s102_s1, 512, %s104_s21, [#allocation13], %s2133_s27, %s2133_s27, %s2134_s28  }
  0x13   :  { %s60_s25 = sshll.u32 %s2611_s2, 4  ;;  %s86_s12 = sshll.u32 %s2613_s4, 4  ;;  %s61_s25 = int_to_ptr.hbm [resolvable:$true] %s60_s25  ;;  %s87_s12 = int_to_ptr.hbm [resolvable:$true] %s86_s12 }
  0x14   :  { %42 = dma.hbm_to_vmem [thread:$0]  %s35_s19, 1024, %s37_s6, [#allocation4], %s2133_s27, %s2133_s27, %s2134_s28  }
  0x15   :  { %s2138_s29 = smov [#allocation8]   ;;  %s2139_s16 = smov [#allocation11]  }
  0x16   :  { %s62_s30 = sshll.u32 %s2138_s29, 4  ;;  %s88_s2 = sshll.u32 %s2139_s16, 4  ;;  %s63_s30 = int_to_ptr.vmem [resolvable:$true] %s62_s30  ;;  %s89_s2 = int_to_ptr.vmem [resolvable:$true] %s88_s2 }
  0x17   :  { %68 = dma.hbm_to_vmem [thread:$0]  %s61_s25, 256, %s63_s30, [#allocation7], %s2133_s27, %s2133_s27, %s2134_s28  }
  0x18   :  { %s114_s3 = sshll.u32 %s2616_s7, 4  ;;  %s129_s19 = sshll.u32 %s2618_s9, 4  ;;  %s115_s3 = int_to_ptr.hbm [resolvable:$true] %s114_s3  ;;  %s130_s19 = int_to_ptr.hbm [resolvable:$true] %s129_s19 }
  0x19   :  { %94 = dma.hbm_to_vmem [thread:$0]  %s87_s12, 512, %s89_s2, [#allocation10], %s2133_s27, %s2133_s27, %s2134_s28  }
  0x1a   :  { %s2140_s20 = smov [#allocation14]   ;;  %s2141_s22 = smov [#allocation15]  }
  0x1b   :  { %s116_s21 = sshll.u32 %s2140_s20, 4  ;;  %s131_s7 = sshll.u32 %s2141_s22, 4  ;;  %s117_s21 = int_to_ptr.vmem [resolvable:$true] %s116_s21  ;;  %s132_s7 = int_to_ptr.vmem [resolvable:$true] %s131_s7 }
  0x1c   :  { %122 = dma.hbm_to_vmem [thread:$0]  %s115_s3, 512, %s117_s21, [#allocation13], %s2133_s27, %s2133_s27, %s2134_s28  }
  0x1d   :  { %137 = dma.hbm_to_vmem [thread:$0]  %s130_s19, 512, %s132_s7, [#allocation16], %s2133_s27, %s2133_s27, %s2134_s28  }
  0x1e   :  { %2118 = dma.done.wait [#allocation4], 1024  }
  0x1f   :  { %2119 = vsyncadd [#allocation4], 4294966272 }
  0x20   :  { %2120 = dma.done.wait [#allocation7], 512  }
  0x21   :  { %2121 = vsyncadd [#allocation7], 4294966784 }
  0x22   :  { %2122 = dma.done.wait [#allocation10], 768  }
  0x23   :  { %2123 = vsyncadd [#allocation10], 4294966528 }
  0x24   :  { %2124 = dma.done.wait [#allocation13], 1024  }
  0x25   :  { %2125 = vsyncadd [#allocation13], 4294966272 }
  0x26   :  { %2126 = dma.done.wait [#allocation16], 512  }
  0x27   :  { %2127 = vsyncadd [#allocation16], 4294966784  ;;  %v2278_v1 = vld [vmem:[#allocation11 + $0x18] sm:$0xff]  ;;  %v2280_v3 = vld [vmem:[#allocation11 + $0x10] sm:$0xff]  ;;  %vm249_vm0 = vcmask 1041409   ;;  %vm252_vm1 = vcmask 1042434  }
  0x28   :  { %v424_v2 = vld [vmem:[#allocation9 + $0x8] sm:$0xff]  ;;  %509 = vmatpush.msra.mxu1 %v2278_v1  ;;  %v423_v4 = vld [vmem:[#allocation9] sm:$0xff]  ;;  %v2283_v5 = vld [vmem:[#allocation11 + $0x8] sm:$0xff]  ;;  %vm255_vm2 = vcmask 1043459   ;;  %vm258_vm3 = vcmask 1044484   ;;  %576 = vmatpush.msra.mxu2 %v2278_v1  ;;  %vm261_vm4 = vcmask 1045509  }
  0x29   :  { %464 = vmatpush.msra.mxu0 %v424_v2  ;;  %v176_v6 = vld [vmem:[#allocation3] sm:$0x1]  ;;  %v177_v7 = vld [vmem:[#allocation3 + $0x8] sm:$0x1]  ;;  %v178_v8 = vld [vmem:[#allocation3 + $0x10] sm:$0x1] }
  0x2a   :  { %v179_v9 = vld [vmem:[#allocation3 + $0x18] sm:$0x1]  ;;  %510 = vmatpush.msra.mxu1 %v2280_v3  ;;  %v180_v10 = vld [vmem:[#allocation3 + $0x20] sm:$0x1]  ;;  %v181_v11 = vld [vmem:[#allocation3 + $0x28] sm:$0x1]  ;;  %577 = vmatpush.msra.mxu2 %v2280_v3 }
  0x2b   :  { %465 = vmatpush.msra.mxu0 %v423_v4  ;;  %v182_v12 = vld [vmem:[#allocation3 + $0x30] sm:$0x1]  ;;  %v248_v13 = vrot.slane %v177_v7, 7  ;;  %v251_v14 = vrot.slane %v178_v8, 6  ;;  %v254_v15 = vrot.slane %v179_v9, 5  ;;  %v257_v17 = vrot.slane %v180_v10, 4 }
  0x2c   :  { %511 = vmatpush.msra.mxu1 %v2283_v5  ;;  %v183_v16 = vld [vmem:[#allocation3 + $0x38] sm:$0x1]  ;;  %v2290_v18 = vld [vmem:[#allocation11] sm:$0xff]  ;;  %v491_v19 = vld [vmem:[#allocation6] sm:$0xff]  ;;  %vm493_vm5 = vcmask 261120   ;;  %v260_v21 = vrot.slane %v181_v11, 3  ;;  %578 = vmatpush.msra.mxu2 %v2283_v5 }
  0x2d   :  { %828 = vmatpush.msrb.mxu0 %v2278_v1  ;;  %v250_v20 = vsel %vm249_vm0, %v248_v13, %v176_v6  ;;  %v263_v22 = vrot.slane %v182_v12, 2  ;;  %vm264_vm6 = vcmask 1046534   ;;  %v266_v25 = vrot.slane %v183_v16, 1  ;;  %v2322_v30 = vld [vmem:[%s2614_s5] ss:$0 sm:$0xff]  ;;  %s2142_s23 = smov 64  }
  0x2e   :  { %v253_v23 = vsel %vm252_vm1, %v251_v14, %v250_v20  ;;  %512 = vmatpush.msra.mxu1 %v2290_v18  ;;  %579 = vmatpush.msra.mxu2 %v2290_v18  ;;  %vm267_vm7 = vcmask 1047559   ;;  %vm433_vm8 = vcmask 130048   ;;  %v492_v36 = vld [vmem:[#allocation8] sm:$0xff]  ;;  %s2143_s24 = smov 32   ;;  %v1013_v57 = vld [vmem:[#allocation12 + $0x18] sm:$0xff]  ;;  %v1012_v58 = vld [vmem:[#allocation12 + $0x10] sm:$0xff] }
  0x2f   :  { %829 = vmatpush.msrb.mxu0 %v2280_v3  ;;  %v256_v24 = vsel %vm255_vm2, %v254_v15, %v253_v23  ;;  %1686 = vmatmul.msk.f32.vlgmr.msra.gmra.mxu1 %vm493_vm5, %v491_v19  ;;  %v1011_v59 = vld [vmem:[#allocation12 + $0x8] sm:$0xff]  ;;  %v1010_v60 = vld [vmem:[#allocation12] sm:$0xff]  ;;  %v185_v63 = vld [vmem:[#allocation3 + $0x9] sm:$0x1]  ;;  %s2145_s30 = smov [#allocation17]   ;;  %s1641_s1 = sshll.u32 %s2623_s14, 4  ;;  %s1642_s1 = int_to_ptr.hbm [resolvable:$true] %s1641_s1 }
  0x30   :  { %v259_v26 = vsel %vm258_vm3, %v257_v17, %v256_v24  ;;  %639 = vmatpush.msrb.mxu2 %v2278_v1  ;;  %702 = vmatpush.msrb.mxu1 %v2278_v1  ;;  %v186_v0 = vld [vmem:[#allocation3 + $0x11] sm:$0x1]  ;;  %v277_v2 = vrot.slane %v185_v63, 7  ;;  %v184_v4 = vld [vmem:[#allocation3 + $0x1] sm:$0x1]  ;;  %s1639_s16 = sshll.u32 %s2145_s30, 4  ;;  %s1640_s16 = int_to_ptr.vmem [resolvable:$true] %s1639_s16 }
  0x31   :  { %v262_v27 = vsel %vm261_vm4, %v260_v21, %v259_v26  ;;  %830 = vmatpush.msrb.mxu0 %v2283_v5  ;;  %1036 = vmatpush.msra.mxu3 %v1013_v57  ;;  %v187_v6 = vld [vmem:[#allocation3 + $0x19] sm:$0x1]  ;;  %v279_v7 = vrot.slane %v186_v0, 6  ;;  %v188_v8 = vld [vmem:[#allocation3 + $0x21] sm:$0x1]  ;;  %s2146_s3 = smov [#allocation18]  }
  0x32   :  { %v265_v28 = vsel %vm264_vm6, %v263_v22, %v262_v27  ;;  %640 = vmatpush.msrb.mxu2 %v2280_v3  ;;  %703 = vmatpush.msrb.mxu1 %v2280_v3  ;;  %v278_v9 = vsel %vm249_vm0, %v277_v2, %v184_v4  ;;  %v281_v10 = vrot.slane %v187_v6, 5  ;;  %v189_v11 = vld [vmem:[#allocation3 + $0x29] sm:$0x1]  ;;  %v283_v13 = vrot.slane %v188_v8, 4  ;;  %v190_v14 = vld [vmem:[#allocation3 + $0x31] sm:$0x1] }
  0x33   :  { %v268_v29 = vsel %vm267_vm7, %v266_v25, %v265_v28  ;;  %831 = vmatpush.msrb.mxu0 %v2290_v18  ;;  %1037 = vmatpush.msra.mxu3 %v1012_v58  ;;  %v280_v12 = vsel %vm252_vm1, %v279_v7, %v278_v9  ;;  %v285_v16 = vrot.slane %v189_v11, 3  ;;  %v191_v17 = vld [vmem:[#allocation3 + $0x39] sm:$0x1]  ;;  %v287_v20 = vrot.slane %v190_v14, 2  ;;  %v192_v57 = vld [vmem:[#allocation3 + $0x2] sm:$0x1] }
  0x34   :  { %1678 = vmatmul.msk.f32.vlgmr.msra.gmra.mxu0 %vm433_vm8, %v268_v29  ;;  %641 = vmatpush.msrb.mxu2 %v2283_v5  ;;  %v282_v15 = vsel %vm255_vm2, %v281_v10, %v280_v12  ;;  %v289_v22 = vrot.slane %v191_v17, 1  ;;  %v195_v58 = vld [vmem:[#allocation3 + $0x1a] sm:$0x1]  ;;  %v198_v2 = vld [vmem:[#allocation3 + $0x32] sm:$0x1]  ;;  %s1652_s4 = sshll.u32 %s2146_s3, 4  ;;  %s1653_s4 = int_to_ptr.vmem [resolvable:$true] %s1652_s4 }
  0x35   :  { %704 = vmatpush.msrb.mxu1 %v2283_v5  ;;  %1038 = vmatpush.msra.mxu3 %v1011_v59  ;;  %v284_v19 = vsel %vm258_vm3, %v283_v13, %v282_v15  ;;  %v199_v7 = vld [vmem:[#allocation3 + $0x3a] sm:$0x1]  ;;  %v309_v9 = vrot.slane %v198_v2, 2 }
  0x36   :  { %642 = vmatpush.msrb.mxu2 %v2290_v18  ;;  %v286_v21 = vsel %vm261_vm4, %v285_v16, %v284_v19  ;;  %v311_v11 = vrot.slane %v199_v7, 1 }
  0x37   :  { %705 = vmatpush.msrb.mxu1 %v2290_v18  ;;  %1039 = vmatpush.msra.mxu3 %v1010_v60  ;;  %v288_v23 = vsel %vm264_vm6, %v287_v20, %v286_v21  ;;  %v196_v60 = vld [vmem:[#allocation3 + $0x22] sm:$0x1] }
  0x38   :  { %v290_v24 = vsel %vm267_vm7, %v289_v22, %v288_v23  ;;  %v305_v0 = vrot.slane %v196_v60, 4 }
  0x39   :  { %891 = vmatpush.msra.mxu1 %v2278_v1 }
  0x3b   :  { %892 = vmatpush.msra.mxu1 %v2280_v3 }
  0x3c   :  { %1679 = vmatmul.msk.f32.gmra.mxu0 %vm433_vm8, %v290_v24 }
  0x3d   :  { %893 = vmatpush.msra.mxu1 %v2283_v5 }
  0x3f   :  { %894 = vmatpush.msra.mxu1 %v2290_v18 }
  0xac   :  { %v514_v32 = vpop.f32.mrf.mxu1 }
  0xb1   :  { %v467_v31 = vpop.f32.mrf.mxu0 }
  0xb2   :  { %v468_v33 = vadd.f32 %v2322_v30, %v467_v31 }
  0xb4   :  { %v517_v34 = vadd.f32 %v514_v32, %v468_v33 }
  0xb6   :  { %1747 = vtanh.f32 %v517_v34  ;;  %v1687_v37 = vmul.f32 -1.442695, %v517_v34 }
  0xb8   :  { %1749 = vpow2.f32 %v1687_v37 }
  0xb9   :  { %v470_v26 = vpop.f32.mrf.mxu0 }
  0xba   :  { %v471_v27 = vadd.f32 %v2322_v30, %v470_v26 }
  0xbc   :  { %v1748_v35 = vpop.eup %1747 }
  0xbd   :  { %544 = vrot.lane.b32.xlu0 %v1748_v35, %s2142_s23 }
  0xbe   :  { %v1750_v38 = vpop.eup %1749 }
  0xbf   :  { %v521_v39 = vadd.f32 1.0, %v1750_v38 }
  0xc1   :  { %1751 = vrcp.f32 %v521_v39  ;;  %v533_v45 = vand.u32 2147483648, %v521_v39  ;;  %vm527_vm10 = vweird.f32 %v521_v39  ;;  %v531_v46 = vand.u32 2147483647, %v521_v39 }
  0xc3   :  { %v534_v48 = vor.u32 1.1754944e-38, %v533_v45  ;;  %vm532_vm12 = vcmp.eq.f32.partialorder %v531_v46, 8.507059e+37 }
  0xc5   :  { %539 = vrot.lane.b32.xlu0 %v492_v36, %s2143_s24 }
  0xc7   :  { %v1752_v40 = vpop.eup %1751 }
  0xc8   :  { %v523_v41 = vmul.f32 %v1752_v40, %v521_v39  ;;  %vm528_vm9 = vweird.f32 %v1752_v40 }
  0xc9   :  { %vm529_vm11 = vmor %vm527_vm10, %vm528_vm9 }
  0xca   :  { %v524_v42 = vsub.f32 1.0, %v523_v41 }
  0xcc   :  { %v525_v43 = vmul.f32 %v1752_v40, %v524_v42 }
  0xce   :  { %v526_v44 = vadd.f32 %v1752_v40, %v525_v43 }
  0xd0   :  { %v530_v47 = vsel %vm529_vm11, %v1752_v40, %v526_v44 }
  0xd1   :  { %v535_v50 = vsel %vm532_vm12, %v534_v48, %v530_v47 }
 0x12f   :  { %v545_v49 = vpop.permute.xlu0 %544 }
 0x130   :  { %v547_v51 = vmul.f32 %v545_v49, %v535_v50 }
 0x132   :  { %549 = vrot.lane.b32.xlu1 %v547_v51, %s2143_s24 }
 0x137   :  { %v540_v52 = vpop.permute.xlu0 %539 }
 0x138   :  { %v542_v53 = vmul.f32 %v540_v52, %v535_v50 }
 0x1a4   :  { %v550_v54 = vpop.permute.xlu1 %549 }
 0x1a5   :  { %v2328_v55 = vadd.f32 %v550_v54, %v542_v53  ;;  %v193_v53 = vld [vmem:[#allocation3 + $0xa] sm:$0x1]  ;;  %v194_v54 = vld [vmem:[#allocation3 + $0x12] sm:$0x1] }
 0x1a6   :  { %v301_v59 = vrot.slane %v194_v54, 6 }
 0x1a7   :  { %1753 = vtanh.f32 %v2328_v55 }
 0x1ad   :  { %v1754_v56 = vpop.eup %1753 }
 0x1ae   :  { %555 = vrot.lane.b32.xlu1 %v1754_v56, %s2142_s23  ;;  %v299_v56 = vrot.slane %v193_v53, 7 }
 0x220   :  { %v556_v61 = vpop.permute.xlu1 %555 }
 0x221   :  { %v558_v62 = vmul.f32 %v556_v61, %v535_v50  ;;  %v303_v61 = vrot.slane %v195_v58, 5 }
 0x223   :  { %560 = vrot.lane.b32.xlu2 %v558_v62, %s2143_s24  ;;  %v197_v62 = vld [vmem:[#allocation3 + $0x2a] sm:$0x1] }
 0x224   :  { %v307_v6 = vrot.slane %v197_v62, 3 }
 0x27d   :  { %v561_v25 = vpop.permute.xlu2 %560 }
 0x27e   :  { %1688 = vmatmul.msk.f32.vlgmr.msra.gmra.mxu2 %vm493_vm5, %v561_v25  ;;  %1702 = vmatmul.msk.f32.vlgmr.msra.gmra.mxu3 %vm493_vm5, %v561_v25 }
 0x27f   :  { %765 = vmatpush.msra.mxu2 %v2278_v1 }
 0x281   :  { %766 = vmatpush.msra.mxu2 %v2280_v3 }
 0x283   :  { %767 = vmatpush.msra.mxu2 %v2283_v5 }
 0x285   :  { %768 = vmatpush.msra.mxu2 %v2290_v18 }
 0x301   :  { %v581_v28 = vpop.f32.mrf.mxu2 }
 0x302   :  { %v584_v29 = vadd.f32 %v581_v28, %v471_v27 }
 0x304   :  { %1755 = vtanh.f32 %v584_v29  ;;  %v1689_v32 = vmul.f32 -1.442695, %v584_v29 }
 0x306   :  { %1757 = vpow2.f32 %v1689_v32 }
 0x30a   :  { %v1756_v31 = vpop.eup %1755 }
 0x30b   :  { %607 = vrot.lane.b32.xlu2 %v1756_v31, %s2142_s23 }
 0x30c   :  { %v1758_v33 = vpop.eup %1757 }
 0x30d   :  { %v588_v34 = vadd.f32 1.0, %v1758_v33 }
 0x30f   :  { %1759 = vrcp.f32 %v588_v34  ;;  %v600_v40 = vand.u32 2147483648, %v588_v34  ;;  %vm594_vm14 = vweird.f32 %v588_v34  ;;  %v598_v41 = vand.u32 2147483647, %v588_v34 }
 0x311   :  { %v601_v43 = vor.u32 1.1754944e-38, %v600_v40  ;;  %vm599_vm9 = vcmp.eq.f32.partialorder %v598_v41, 8.507059e+37  ;;  %v203_v40 = vld [vmem:[#allocation3 + $0x1b] sm:$0x1]  ;;  %v204_v41 = vld [vmem:[#allocation3 + $0x23] sm:$0x1] }
 0x315   :  { %v1760_v35 = vpop.eup %1759 }
 0x316   :  { %v590_v36 = vmul.f32 %v1760_v35, %v588_v34  ;;  %vm595_vm13 = vweird.f32 %v1760_v35 }
 0x317   :  { %vm596_vm15 = vmor %vm594_vm14, %vm595_vm13 }
 0x318   :  { %v591_v37 = vsub.f32 1.0, %v590_v36 }
 0x31a   :  { %v592_v38 = vmul.f32 %v1760_v35, %v591_v37  ;;  %v200_v37 = vld [vmem:[#allocation3 + $0x3] sm:$0x1] }
 0x31c   :  { %v593_v39 = vadd.f32 %v1760_v35, %v592_v38  ;;  %v201_v38 = vld [vmem:[#allocation3 + $0xb] sm:$0x1] }
 0x31e   :  { %v597_v42 = vsel %vm596_vm15, %v1760_v35, %v593_v39  ;;  %v202_v39 = vld [vmem:[#allocation3 + $0x13] sm:$0x1] }
 0x31f   :  { %v602_v45 = vsel %vm599_vm9, %v601_v43, %v597_v42  ;;  %v205_v42 = vld [vmem:[#allocation3 + $0x2b] sm:$0x1]  ;;  %v206_v43 = vld [vmem:[#allocation3 + $0x33] sm:$0x1] }
 0x320   :  { %v605_v47 = vmul.f32 %v602_v45, %v2328_v55  ;;  %v300_v55 = vsel %vm249_vm0, %v299_v56, %v192_v57 }
 0x321   :  { %v302_v63 = vsel %vm252_vm1, %v301_v59, %v300_v55 }
 0x322   :  { %v304_v4 = vsel %vm255_vm2, %v303_v61, %v302_v63 }
 0x323   :  { %v306_v8 = vsel %vm258_vm3, %v305_v0, %v304_v4 }
 0x324   :  { %v308_v10 = vsel %vm261_vm4, %v307_v6, %v306_v8 }
 0x325   :  { %v310_v12 = vsel %vm264_vm6, %v309_v9, %v308_v10 }
 0x326   :  { %v312_v13 = vsel %vm267_vm7, %v311_v11, %v310_v12 }
 0x327   :  { %1680 = vmatmul.msk.f32.gmra.mxu0 %vm433_vm8, %v312_v13 }
 0x365   :  { %v608_v44 = vpop.permute.xlu2 %607 }
 0x366   :  { %v610_v46 = vmul.f32 %v608_v44, %v602_v45  ;;  %v321_v44 = vrot.slane %v201_v38, 7 }
 0x368   :  { %612 = vrot.lane.b32.xlu0 %v610_v46, %s2143_s24  ;;  %v207_v46 = vld [vmem:[#allocation3 + $0x3b] sm:$0x1] }
 0x369   :  { %v333_v54 = vrot.slane %v207_v46, 1 }
 0x3a4   :  { %v473_v15 = vpop.f32.mrf.mxu0 }
 0x3a5   :  { %v474_v16 = vadd.f32 %v2322_v30, %v473_v15 }
 0x3da   :  { %v613_v48 = vpop.permute.xlu0 %612 }
 0x3db   :  { %v2351_v49 = vadd.f32 %v613_v48, %v605_v47  ;;  %v325_v47 = vrot.slane %v203_v40, 5  ;;  %v327_v48 = vrot.slane %v204_v41, 4  ;;  %v215_v40 = vld [vmem:[#allocation3 + $0x3c] sm:$0x1] }
 0x3dd   :  { %1761 = vtanh.f32 %v2351_v49 }
 0x3e3   :  { %v1762_v50 = vpop.eup %1761 }
 0x3e4   :  { %618 = vrot.lane.b32.xlu1 %v1762_v50, %s2142_s23  ;;  %v329_v50 = vrot.slane %v205_v42, 3 }
 0x456   :  { %v619_v51 = vpop.permute.xlu1 %618 }
 0x457   :  { %v621_v52 = vmul.f32 %v619_v51, %v602_v45  ;;  %v323_v45 = vrot.slane %v202_v39, 6 }
 0x459   :  { %623 = vrot.lane.b32.xlu2 %v621_v52, %s2143_s24  ;;  %v331_v52 = vrot.slane %v206_v43, 2 }
 0x4b3   :  { %v624_v14 = vpop.permute.xlu2 %623 }
 0x4b4   :  { %1690 = vmatmul.msk.f32.vlgmr.msrb.gmra.mxu2 %vm493_vm5, %v624_v14  ;;  %1703 = vmatmul.msk.f32.gmra.mxu3 %vm493_vm5, %v624_v14 }
 0x4b5   :  { %954 = vmatpush.msrb.mxu2 %v2278_v1 }
 0x4b7   :  { %955 = vmatpush.msrb.mxu2 %v2280_v3 }
 0x4b9   :  { %956 = vmatpush.msrb.mxu2 %v2283_v5 }
 0x4bb   :  { %957 = vmatpush.msrb.mxu2 %v2290_v18 }
 0x537   :  { %v644_v17 = vpop.f32.mrf.mxu2 }
 0x538   :  { %v647_v19 = vadd.f32 %v644_v17, %v474_v16 }
 0x53a   :  { %1763 = vtanh.f32 %v647_v19  ;;  %v1691_v21 = vmul.f32 -1.442695, %v647_v19 }
 0x53c   :  { %1765 = vpow2.f32 %v1691_v21 }
 0x540   :  { %v1764_v20 = vpop.eup %1763 }
 0x541   :  { %670 = vrot.lane.b32.xlu0 %v1764_v20, %s2142_s23 }
 0x542   :  { %v1766_v22 = vpop.eup %1765 }
 0x543   :  { %v651_v23 = vadd.f32 1.0, %v1766_v22 }
 0x545   :  { %1767 = vrcp.f32 %v651_v23  ;;  %v663_v18 = vand.u32 2147483648, %v651_v23  ;;  %vm657_vm11 = vweird.f32 %v651_v23  ;;  %v661_v26 = vand.u32 2147483647, %v651_v23 }
 0x547   :  { %v664_v28 = vor.u32 1.1754944e-38, %v663_v18  ;;  %vm662_vm13 = vcmp.eq.f32.partialorder %v661_v26, 8.507059e+37  ;;  %v210_v18 = vld [vmem:[#allocation3 + $0x14] sm:$0x1] }
 0x54b   :  { %v1768_v1 = vpop.eup %1767 }
 0x54c   :  { %v653_v3 = vmul.f32 %v1768_v1, %v651_v23  ;;  %vm658_vm10 = vweird.f32 %v1768_v1 }
 0x54d   :  { %vm659_vm12 = vmor %vm657_vm11, %vm658_vm10 }
 0x54e   :  { %v654_v24 = vsub.f32 1.0, %v653_v3 }
 0x550   :  { %v655_v5 = vmul.f32 %v1768_v1, %v654_v24 }
 0x552   :  { %v656_v25 = vadd.f32 %v1768_v1, %v655_v5 }
 0x554   :  { %v660_v27 = vsel %vm659_vm12, %v1768_v1, %v656_v25  ;;  %v209_v25 = vld [vmem:[#allocation3 + $0xc] sm:$0x1] }
 0x555   :  { %v665_v31 = vsel %vm662_vm13, %v664_v28, %v660_v27  ;;  %v343_v26 = vrot.slane %v209_v25, 7  ;;  %v208_v27 = vld [vmem:[#allocation3 + $0x4] sm:$0x1]  ;;  %v211_v28 = vld [vmem:[#allocation3 + $0x1c] sm:$0x1] }
 0x556   :  { %v668_v33 = vmul.f32 %v665_v31, %v2351_v49  ;;  %v322_v49 = vsel %vm249_vm0, %v321_v44, %v200_v37  ;;  %v214_v37 = vld [vmem:[#allocation3 + $0x34] sm:$0x1]  ;;  %v355_v44 = vrot.slane %v215_v40, 1  ;;  %v225_v25 = vld [vmem:[#allocation3 + $0xe] sm:$0x1] }
 0x557   :  { %v324_v51 = vsel %vm252_vm1, %v323_v45, %v322_v49  ;;  %v353_v42 = vrot.slane %v214_v37, 2  ;;  %v231_v37 = vld [vmem:[#allocation3 + $0x3e] sm:$0x1] }
 0x558   :  { %v326_v53 = vsel %vm255_vm2, %v325_v47, %v324_v51 }
 0x559   :  { %v328_v56 = vsel %vm258_vm3, %v327_v48, %v326_v53 }
 0x55a   :  { %v330_v57 = vsel %vm261_vm4, %v329_v50, %v328_v56 }
 0x55b   :  { %v332_v58 = vsel %vm264_vm6, %v331_v52, %v330_v57 }
 0x55c   :  { %v334_v59 = vsel %vm267_vm7, %v333_v54, %v332_v58 }
 0x55d   :  { %1681 = vmatmul.msk.f32.gmra.mxu0 %vm433_vm8, %v334_v59 }
 0x5b3   :  { %v671_v29 = vpop.permute.xlu0 %670 }
 0x5b4   :  { %v673_v32 = vmul.f32 %v671_v29, %v665_v31  ;;  %v345_v29 = vrot.slane %v210_v18, 6  ;;  %v226_v18 = vld [vmem:[#allocation3 + $0x16] sm:$0x1] }
 0x5b6   :  { %675 = vrot.lane.b32.xlu1 %v673_v32, %s2143_s24  ;;  %v344_v32 = vsel %vm249_vm0, %v343_v26, %v208_v27  ;;  %v227_v27 = vld [vmem:[#allocation3 + $0x1e] sm:$0x1] }
 0x5da   :  { %v476_v62 = vpop.f32.mrf.mxu0 }
 0x5db   :  { %v477_v63 = vadd.f32 %v2322_v30, %v476_v62 }
 0x628   :  { %v676_v34 = vpop.permute.xlu1 %675 }
 0x629   :  { %v678_v35 = vadd.f32 %v676_v34, %v668_v33  ;;  %v347_v33 = vrot.slane %v211_v28, 5  ;;  %v213_v34 = vld [vmem:[#allocation3 + $0x2c] sm:$0x1]  ;;  %v228_v28 = vld [vmem:[#allocation3 + $0x26] sm:$0x1] }
 0x62a   :  { %v351_v39 = vrot.slane %v213_v34, 3  ;;  %v387_v34 = vrot.slane %v225_v25, 7 }
 0x62b   :  { %1769 = vtanh.f32 %v678_v35 }
 0x631   :  { %v1770_v36 = vpop.eup %1769 }
 0x632   :  { %681 = vrot.lane.b32.xlu2 %v1770_v36, %s2142_s23 }
 0x68c   :  { %v682_v60 = vpop.permute.xlu2 %681 }
 0x68d   :  { %v684_v55 = vmul.f32 %v682_v60, %v665_v31  ;;  %v212_v31 = vld [vmem:[#allocation3 + $0x24] sm:$0x1] }
 0x68e   :  { %v349_v36 = vrot.slane %v212_v31, 4 }
 0x68f   :  { %686 = vrot.lane.b32.xlu0 %v684_v55, %s2143_s24 }
 0x701   :  { %v687_v61 = vpop.permute.xlu0 %686 }
 0x702   :  { %1692 = vmatmul.msk.f32.vlgmr.msrb.gmra.mxu1 %vm493_vm5, %v687_v61  ;;  %1704 = vmatmul.msk.f32.gmra.mxu3 %vm493_vm5, %v687_v61 }
 0x77f   :  { %v707_v0 = vpop.f32.mrf.mxu1 }
 0x780   :  { %v710_v2 = vadd.f32 %v707_v0, %v477_v63 }
 0x782   :  { %1771 = vtanh.f32 %v710_v2  ;;  %v1693_v6 = vmul.f32 -1.442695, %v710_v2 }
 0x784   :  { %1773 = vpow2.f32 %v1693_v6 }
 0x788   :  { %v1772_v4 = vpop.eup %1771 }
 0x789   :  { %733 = vrot.lane.b32.xlu1 %v1772_v4, %s2142_s23 }
 0x78a   :  { %v1774_v7 = vpop.eup %1773 }
 0x78b   :  { %v714_v8 = vadd.f32 1.0, %v1774_v7 }
 0x78d   :  { %1775 = vrcp.f32 %v714_v8  ;;  %v726_v14 = vand.u32 2147483648, %v714_v8  ;;  %vm720_vm15 = vweird.f32 %v714_v8  ;;  %v724_v15 = vand.u32 2147483647, %v714_v8 }
 0x78f   :  { %v727_v17 = vor.u32 1.1754944e-38, %v726_v14  ;;  %vm725_vm10 = vcmp.eq.f32.partialorder %v724_v15, 8.507059e+37  ;;  %v219_v14 = vld [vmem:[#allocation3 + $0x1d] sm:$0x1]  ;;  %v220_v15 = vld [vmem:[#allocation3 + $0x25] sm:$0x1] }
 0x793   :  { %v1776_v9 = vpop.eup %1775 }
 0x794   :  { %v716_v10 = vmul.f32 %v1776_v9, %v714_v8  ;;  %vm721_vm14 = vweird.f32 %v1776_v9 }
 0x795   :  { %vm722_vm9 = vmor %vm720_vm15, %vm721_vm14 }
 0x796   :  { %v717_v11 = vsub.f32 1.0, %v716_v10 }
 0x798   :  { %v718_v12 = vmul.f32 %v1776_v9, %v717_v11  ;;  %v216_v11 = vld [vmem:[#allocation3 + $0x5] sm:$0x1] }
 0x79a   :  { %v719_v13 = vadd.f32 %v1776_v9, %v718_v12  ;;  %v217_v12 = vld [vmem:[#allocation3 + $0xd] sm:$0x1] }
 0x79c   :  { %v723_v16 = vsel %vm722_vm9, %v1776_v9, %v719_v13  ;;  %v218_v13 = vld [vmem:[#allocation3 + $0x15] sm:$0x1] }
 0x79d   :  { %v728_v20 = vsel %vm725_vm10, %v727_v17, %v723_v16  ;;  %v221_v16 = vld [vmem:[#allocation3 + $0x2d] sm:$0x1]  ;;  %v222_v17 = vld [vmem:[#allocation3 + $0x35] sm:$0x1] }
 0x79e   :  { %v731_v22 = vmul.f32 %v728_v20, %v678_v35  ;;  %v346_v35 = vsel %vm252_vm1, %v345_v29, %v344_v32  ;;  %v229_v29 = vld [vmem:[#allocation3 + $0x2e] sm:$0x1] }
 0x79f   :  { %v348_v38 = vsel %vm255_vm2, %v347_v33, %v346_v35  ;;  %v230_v33 = vld [vmem:[#allocation3 + $0x36] sm:$0x1]  ;;  %v389_v35 = vrot.slane %v226_v18, 6  ;;  %v395_v40 = vrot.slane %v229_v29, 3 }
 0x7a0   :  { %v350_v41 = vsel %vm258_vm3, %v349_v36, %v348_v38  ;;  %v391_v38 = vrot.slane %v227_v27, 5 }
 0x7a1   :  { %v352_v43 = vsel %vm261_vm4, %v351_v39, %v350_v41  ;;  %v393_v39 = vrot.slane %v228_v28, 4 }
 0x7a2   :  { %v354_v45 = vsel %vm264_vm6, %v353_v42, %v352_v43  ;;  %v232_v43 = vld [vmem:[#allocation3 + $0x7] sm:$0x1] }
 0x7a3   :  { %v356_v46 = vsel %vm267_vm7, %v355_v44, %v354_v45  ;;  %v233_v44 = vld [vmem:[#allocation3 + $0xf] sm:$0x1]  ;;  %v234_v45 = vld [vmem:[#allocation3 + $0x17] sm:$0x1] }
 0x7a4   :  { %1682 = vmatmul.msk.f32.gmra.mxu0 %vm433_vm8, %v356_v46 }
 0x7fb   :  { %v734_v19 = vpop.permute.xlu1 %733 }
 0x7fc   :  { %v736_v21 = vmul.f32 %v734_v19, %v728_v20  ;;  %v365_v19 = vrot.slane %v217_v12, 7 }
 0x7fe   :  { %738 = vrot.lane.b32.xlu2 %v736_v21, %s2143_s24  ;;  %v223_v21 = vld [vmem:[#allocation3 + $0x3d] sm:$0x1] }
 0x7ff   :  { %v377_v32 = vrot.slane %v223_v21, 1 }
 0x821   :  { %v479_v48 = vpop.f32.mrf.mxu0 }
 0x822   :  { %v480_v49 = vadd.f32 %v2322_v30, %v479_v48  ;;  %v397_v48 = vrot.slane %v230_v33, 2 }
 0x858   :  { %v739_v23 = vpop.permute.xlu2 %738 }
 0x859   :  { %v741_v1 = vadd.f32 %v739_v23, %v731_v22  ;;  %v369_v22 = vrot.slane %v219_v14, 5  ;;  %v371_v23 = vrot.slane %v220_v15, 4 }
 0x85b   :  { %1777 = vtanh.f32 %v741_v1 }
 0x861   :  { %v1778_v3 = vpop.eup %1777 }
 0x862   :  { %744 = vrot.lane.b32.xlu0 %v1778_v3, %s2142_s23  ;;  %v375_v3 = vrot.slane %v222_v17, 2 }
 0x8d4   :  { %v745_v24 = vpop.permute.xlu0 %744 }
 0x8d5   :  { %v747_v5 = vmul.f32 %v745_v24, %v728_v20  ;;  %v367_v20 = vrot.slane %v218_v13, 6  ;;  %v366_v24 = vsel %vm249_vm0, %v365_v19, %v216_v11 }
 0x8d7   :  { %749 = vrot.lane.b32.xlu1 %v747_v5, %s2143_s24  ;;  %v224_v5 = vld [vmem:[#allocation3 + $0x6] sm:$0x1]  ;;  %v368_v26 = vsel %vm252_vm1, %v367_v20, %v366_v24 }
 0x8d8   :  { %v370_v31 = vsel %vm255_vm2, %v369_v22, %v368_v26  ;;  %v388_v42 = vsel %vm249_vm0, %v387_v34, %v224_v5 }
 0x8d9   :  { %v372_v36 = vsel %vm258_vm3, %v371_v23, %v370_v31 }
 0x949   :  { %v750_v47 = vpop.permute.xlu1 %749 }
 0x94a   :  { %1694 = vmatmul.msk.f32.vlgmr.msra.gmra.mxu2 %vm493_vm5, %v750_v47  ;;  %1705 = vmatmul.msk.f32.gmra.mxu3 %vm493_vm5, %v750_v47  ;;  %v390_v47 = vsel %vm252_vm1, %v389_v35, %v388_v42 }
 0x9cd   :  { %v770_v50 = vpop.f32.mrf.mxu2 }
 0x9ce   :  { %v773_v51 = vadd.f32 %v770_v50, %v480_v49  ;;  %v235_v49 = vld [vmem:[#allocation3 + $0x1f] sm:$0x1]  ;;  %v236_v50 = vld [vmem:[#allocation3 + $0x27] sm:$0x1] }
 0x9d0   :  { %1779 = vtanh.f32 %v773_v51  ;;  %v1695_v53 = vmul.f32 -1.442695, %v773_v51 }
 0x9d2   :  { %1781 = vpow2.f32 %v1695_v53  ;;  %v409_v53 = vrot.slane %v233_v44, 7  ;;  %v2453_v44 = vld [vmem:[#allocation14 + $0x18] sm:$0xff] }
 0x9d3   :  { %1084 = vmatpush.msrb.mxu1 %v2453_v44  ;;  %1151 = vmatpush.msra.mxu2 %v2453_v44 }
 0x9d6   :  { %v1780_v52 = vpop.eup %1779 }
 0x9d7   :  { %796 = vrot.lane.b32.xlu2 %v1780_v52, %s2142_s23  ;;  %v392_v52 = vsel %vm255_vm2, %v391_v38, %v390_v47 }
 0x9d8   :  { %v1782_v54 = vpop.eup %1781 }
 0x9d9   :  { %v777_v56 = vadd.f32 1.0, %v1782_v54  ;;  %v411_v54 = vrot.slane %v234_v45, 6  ;;  %v2455_v45 = vld [vmem:[#allocation14 + $0x10] sm:$0xff] }
 0x9da   :  { %1085 = vmatpush.msrb.mxu1 %v2455_v45  ;;  %1152 = vmatpush.msra.mxu2 %v2455_v45 }
 0x9db   :  { %1783 = vrcp.f32 %v777_v56  ;;  %v789_v61 = vand.u32 2147483648, %v777_v56  ;;  %vm783_vm12 = vweird.f32 %v777_v56  ;;  %v787_v62 = vand.u32 2147483647, %v777_v56 }
 0x9dd   :  { %v790_v0 = vor.u32 1.1754944e-38, %v789_v61  ;;  %vm788_vm14 = vcmp.eq.f32.partialorder %v787_v62, 8.507059e+37  ;;  %v410_v61 = vsel %vm249_vm0, %v409_v53, %v232_v43  ;;  %v1041_v53 = vpop.f32.mrf.mxu3 }
 0x9e1   :  { %v1784_v57 = vpop.eup %1783 }
 0x9e2   :  { %v779_v58 = vmul.f32 %v1784_v57, %v777_v56  ;;  %vm784_vm11 = vweird.f32 %v1784_v57  ;;  %v394_v56 = vsel %vm258_vm3, %v393_v39, %v392_v52  ;;  %v2485_v52 = vld [vmem:[%s2617_s8] ss:$0 sm:$0xff] }
 0x9e3   :  { %vm785_vm13 = vmor %vm783_vm12, %vm784_vm11 }
 0x9e4   :  { %v780_v59 = vsub.f32 1.0, %v779_v58  ;;  %v413_v58 = vrot.slane %v235_v49, 5 }
 0x9e6   :  { %v781_v60 = vmul.f32 %v1784_v57, %v780_v59  ;;  %v415_v59 = vrot.slane %v236_v50, 4 }
 0x9e8   :  { %v782_v55 = vadd.f32 %v1784_v57, %v781_v60  ;;  %v396_v60 = vsel %vm261_vm4, %v395_v40, %v394_v56 }
 0x9e9   :  { %v398_v62 = vsel %vm264_vm6, %v397_v48, %v396_v60  ;;  %v1066_v48 = vld [vmem:[#allocation6 + $0x8] sm:$0xff] }
 0x9ea   :  { %v786_v63 = vsel %vm785_vm13, %v1784_v57, %v782_v55  ;;  %v237_v57 = vld [vmem:[#allocation3 + $0x2f] sm:$0x1]  ;;  %v399_v55 = vrot.slane %v231_v37, 1 }
 0x9eb   :  { %v2403_v4 = vsel %vm788_vm14, %v790_v0, %v786_v63  ;;  %v412_v63 = vsel %vm252_vm1, %v411_v54, %v410_v61  ;;  %v238_v0 = vld [vmem:[#allocation3 + $0x37] sm:$0x1]  ;;  %v1042_v54 = vadd.f32 %v2485_v52, %v1041_v53 }
 0x9ec   :  { %v794_v7 = vmul.f32 %v2403_v4, %v741_v1  ;;  %v373_v1 = vrot.slane %v221_v16, 3  ;;  %v419_v11 = vrot.slane %v238_v0, 2 }
 0x9ee   :  { %v374_v41 = vsel %vm261_vm4, %v373_v1, %v372_v36 }
 0x9ef   :  { %v376_v46 = vsel %vm264_vm6, %v375_v3, %v374_v41 }
 0x9f0   :  { %v378_v51 = vsel %vm267_vm7, %v377_v32, %v376_v46  ;;  %v2463_v46 = vld [vmem:[#allocation14] sm:$0xff] }
 0x9f1   :  { %1683 = vmatmul.msk.f32.gmra.mxu0 %vm433_vm8, %v378_v51 }
 0xa31   :  { %v797_v2 = vpop.permute.xlu2 %796 }
 0xa32   :  { %v799_v6 = vmul.f32 %v797_v2, %v2403_v4  ;;  %v414_v2 = vsel %vm255_vm2, %v413_v58, %v412_v63 }
 0xa34   :  { %801 = vrot.lane.b32.xlu0 %v799_v6, %s2143_s24  ;;  %v417_v6 = vrot.slane %v237_v57, 3 }
 0xa6e   :  { %v482_v20 = vpop.f32.mrf.mxu0 }
 0xa6f   :  { %v483_v23 = vadd.f32 %v2322_v30, %v482_v20 }
 0xaa6   :  { %v802_v8 = vpop.permute.xlu0 %801 }
 0xaa7   :  { %v2408_v9 = vadd.f32 %v802_v8, %v794_v7  ;;  %v416_v7 = vsel %vm258_vm3, %v415_v59, %v414_v2  ;;  %v400_v8 = vsel %vm267_vm7, %v399_v55, %v398_v62  ;;  %v1068_v59 = vld [vmem:[#allocation8 + $0x8] sm:$0xff] }
 0xaa8   :  { %v418_v12 = vsel %vm261_vm4, %v417_v6, %v416_v7  ;;  %1684 = vmatmul.msk.f32.gmra.mxu0 %vm433_vm8, %v400_v8 }
 0xaa9   :  { %1785 = vtanh.f32 %v2408_v9  ;;  %v420_v14 = vsel %vm264_vm6, %v419_v11, %v418_v12 }
 0xaaf   :  { %v1786_v10 = vpop.eup %1785 }
 0xab0   :  { %807 = vrot.lane.b32.xlu1 %v1786_v10, %s2142_s23  ;;  %v239_v10 = vld [vmem:[#allocation3 + $0x3f] sm:$0x1] }
 0xab1   :  { %v421_v13 = vrot.slane %v239_v10, 1 }
 0xab3   :  { %v422_v15 = vsel %vm267_vm7, %v421_v13, %v420_v14 }
 0xab4   :  { %1685 = vmatmul.msk.f32.gmra.mxu0 %vm433_vm8, %v422_v15 }
 0xb22   :  { %v808_v16 = vpop.permute.xlu1 %807 }
 0xb23   :  { %v810_v17 = vmul.f32 %v808_v16, %v2403_v4 }
 0xb25   :  { %812 = vrot.lane.b32.xlu2 %v810_v17, %s2143_s24  ;;  %v2440_v21 = vpop.f32.mrf.mxu0 }
 0xb26   :  { %v486_v49 = vadd.f32 %v2322_v30, %v2440_v21 }
 0xb31   :  { %v2442_v22 = vpop.f32.mrf.mxu0 }
 0xb7f   :  { %v813_v19 = vpop.permute.xlu2 %812 }
 0xb80   :  { %1696 = vmatmul.msk.f32.vlgmr.msrb.gmra.mxu0 %vm493_vm5, %v813_v19  ;;  %1706 = vmatmul.msk.f32.gmra.mxu3 %vm493_vm5, %v813_v19 }
 0xbfd   :  { %v833_v1 = vpop.f32.mrf.mxu0 }
 0xbfe   :  { %v836_v3 = vadd.f32 %v833_v1, %v483_v23 }
 0xc00   :  { %1787 = vtanh.f32 %v836_v3  ;;  %v1697_v4 = vmul.f32 -1.442695, %v836_v3 }
 0xc02   :  { %1789 = vpow2.f32 %v1697_v4 }
 0xc06   :  { %v1788_v24 = vpop.eup %1787 }
 0xc07   :  { %859 = vrot.lane.b32.xlu0 %v1788_v24, %s2142_s23 }
 0xc08   :  { %v1790_v5 = vpop.eup %1789 }
 0xc09   :  { %v840_v25 = vadd.f32 1.0, %v1790_v5 }
 0xc0b   :  { %1791 = vrcp.f32 %v840_v25  ;;  %v852_v31 = vand.u32 2147483648, %v840_v25  ;;  %vm846_vm1 = vweird.f32 %v840_v25  ;;  %v850_v32 = vand.u32 2147483647, %v840_v25 }
 0xc0d   :  { %v853_v34 = vor.u32 1.1754944e-38, %v852_v31  ;;  %vm851_vm3 = vcmp.eq.f32.partialorder %v850_v32, 8.507059e+37 }
 0xc11   :  { %v1792_v18 = vpop.eup %1791 }
 0xc12   :  { %v842_v26 = vmul.f32 %v1792_v18, %v840_v25  ;;  %vm847_vm0 = vweird.f32 %v1792_v18 }
 0xc13   :  { %vm848_vm2 = vmor %vm846_vm1, %vm847_vm0 }
 0xc14   :  { %v843_v27 = vsub.f32 1.0, %v842_v26 }
 0xc16   :  { %v844_v28 = vmul.f32 %v1792_v18, %v843_v27 }
 0xc18   :  { %v845_v29 = vadd.f32 %v1792_v18, %v844_v28 }
 0xc1a   :  { %v849_v33 = vsel %vm848_vm2, %v1792_v18, %v845_v29 }
 0xc1b   :  { %v854_v36 = vsel %vm851_vm3, %v853_v34, %v849_v33 }
 0xc1c   :  { %v857_v38 = vmul.f32 %v854_v36, %v2408_v9  ;;  %v2459_v9 = vld [vmem:[#allocation14 + $0x8] sm:$0xff] }
 0xc1d   :  { %1086 = vmatpush.msrb.mxu1 %v2459_v9  ;;  %1153 = vmatpush.msra.mxu2 %v2459_v9 }
 0xc1f   :  { %1087 = vmatpush.msrb.mxu1 %v2463_v46  ;;  %1154 = vmatpush.msra.mxu2 %v2463_v46 }
 0xc79   :  { %v860_v35 = vpop.permute.xlu0 %859 }
 0xc7a   :  { %v862_v37 = vmul.f32 %v860_v35, %v854_v36 }
 0xc7c   :  { %864 = vrot.lane.b32.xlu1 %v862_v37, %s2143_s24 }
 0xcee   :  { %v865_v39 = vpop.permute.xlu1 %864 }
 0xcef   :  { %v2448_v40 = vadd.f32 %v865_v39, %v857_v38 }
 0xcf1   :  { %1793 = vtanh.f32 %v2448_v40 }
 0xcf7   :  { %v1794_v41 = vpop.eup %1793 }
 0xcf8   :  { %870 = vrot.lane.b32.xlu2 %v1794_v41, %s2142_s23 }
 0xd52   :  { %v871_v42 = vpop.permute.xlu2 %870 }
 0xd53   :  { %v873_v43 = vmul.f32 %v871_v42, %v854_v36 }
 0xd55   :  { %875 = vrot.lane.b32.xlu0 %v873_v43, %s2143_s24 }
 0xdc7   :  { %v876_v47 = vpop.permute.xlu0 %875 }
 0xdc8   :  { %1698 = vmatmul.msk.f32.vlgmr.msra.gmra.mxu1 %vm493_vm5, %v876_v47  ;;  %1707 = vmatmul.msk.f32.gmra.mxu3 %vm493_vm5, %v876_v47  ;;  %v1044_v47 = vpop.f32.mrf.mxu3 }
 0xdc9   :  { %1214 = vmatpush.msra.mxu1 %v2453_v44 }
 0xdcb   :  { %1215 = vmatpush.msra.mxu1 %v2455_v45 }
 0xdcd   :  { %1216 = vmatpush.msra.mxu1 %v2459_v9 }
 0xdcf   :  { %1217 = vmatpush.msra.mxu1 %v2463_v46 }
 0xdd0   :  { %1710 = vmatmul.msk.f32.vlgmr.msrb.gmra.mxu1 %vm493_vm5, %v1066_v48  ;;  %v1045_v48 = vadd.f32 %v2485_v52, %v1044_v47 }
 0xdd1   :  { %1340 = vmatpush.msrb.mxu1 %v2453_v44 }
 0xdd3   :  { %1341 = vmatpush.msrb.mxu1 %v2455_v45 }
 0xdd5   :  { %1342 = vmatpush.msrb.mxu1 %v2459_v9 }
 0xdd7   :  { %1343 = vmatpush.msrb.mxu1 %v2463_v46 }
 0xe45   :  { %v896_v50 = vpop.f32.mrf.mxu1 }
 0xe46   :  { %v899_v51 = vadd.f32 %v896_v50, %v486_v49 }
 0xe48   :  { %1795 = vtanh.f32 %v899_v51  ;;  %v1699_v62 = vmul.f32 -1.442695, %v899_v51 }
 0xe4d   :  { %v1089_v56 = vpop.f32.mrf.mxu1 }
 0xe4e   :  { %v1796_v57 = vpop.eup %1795  ;;  %v1092_v58 = vadd.f32 %v1089_v56, %v1042_v54 }
 0xe4f   :  { %922 = vrot.lane.b32.xlu1 %v1796_v57, %s2142_s23 }
 0xe50   :  { %1797 = vtanh.f32 %v1092_v58  ;;  %v1711_v30 = vmul.f32 -1.442695, %v1092_v58 }
 0xe52   :  { %1799 = vpow2.f32 %v1711_v30 }
 0xe56   :  { %v1798_v60 = vpop.eup %1797 }
 0xe57   :  { %1119 = vrot.lane.b32.xlu2 %v1798_v60, %s2142_s23  ;;  %1114 = vrot.lane.b32.xlu1 %v1068_v59, %s2143_s24 }
 0xe58   :  { %v1800_v55 = vpop.eup %1799 }
 0xe59   :  { %v1096_v61 = vadd.f32 1.0, %v1800_v55 }
 0xe5b   :  { %1801 = vrcp.f32 %v1096_v61  ;;  %v1108_v12 = vand.u32 2147483648, %v1096_v61  ;;  %vm1102_vm6 = vweird.f32 %v1096_v61  ;;  %v1106_v13 = vand.u32 2147483647, %v1096_v61 }
 0xe5c   :  { %1803 = vpow2.f32 %v1699_v62 }
 0xe5d   :  { %v1109_v16 = vor.u32 1.1754944e-38, %v1108_v12  ;;  %vm1107_vm8 = vcmp.eq.f32.partialorder %v1106_v13, 8.507059e+37 }
 0xe61   :  { %v1802_v63 = vpop.eup %1801 }
 0xe62   :  { %v1804_v0 = vpop.eup %1803  ;;  %v1098_v2 = vmul.f32 %v1802_v63, %v1096_v61  ;;  %vm1103_vm4 = vweird.f32 %v1802_v63 }
 0xe63   :  { %v903_v6 = vadd.f32 1.0, %v1804_v0  ;;  %vm1104_vm7 = vmor %vm1102_vm6, %vm1103_vm4 }
 0xe64   :  { %v1099_v7 = vsub.f32 1.0, %v1098_v2 }
 0xe65   :  { %1805 = vrcp.f32 %v903_v6  ;;  %v915_v3 = vand.u32 2147483648, %v903_v6  ;;  %vm909_vm9 = vweird.f32 %v903_v6  ;;  %v913_v24 = vand.u32 2147483647, %v903_v6 }
 0xe66   :  { %v1100_v8 = vmul.f32 %v1802_v63, %v1099_v7 }
 0xe67   :  { %v916_v5 = vor.u32 1.1754944e-38, %v915_v3  ;;  %vm914_vm11 = vcmp.eq.f32.partialorder %v913_v24, 8.507059e+37 }
 0xe68   :  { %v1101_v10 = vadd.f32 %v1802_v63, %v1100_v8 }
 0xe6a   :  { %v1105_v14 = vsel %vm1104_vm7, %v1802_v63, %v1101_v10 }
 0xe6b   :  { %v1806_v11 = vpop.eup %1805  ;;  %v1110_v19 = vsel %vm1107_vm8, %v1109_v16, %v1105_v14 }
 0xe6c   :  { %v905_v15 = vmul.f32 %v1806_v11, %v903_v6  ;;  %vm910_vm15 = vweird.f32 %v1806_v11 }
 0xe6d   :  { %vm911_vm10 = vmor %vm909_vm9, %vm910_vm15 }
 0xe6e   :  { %v906_v21 = vsub.f32 1.0, %v905_v15  ;;  %v1047_v15 = vpop.f32.mrf.mxu3 }
 0xe6f   :  { %v1048_v16 = vadd.f32 %v2485_v52, %v1047_v15 }
 0xe70   :  { %v907_v23 = vmul.f32 %v1806_v11, %v906_v21 }
 0xe72   :  { %v908_v1 = vadd.f32 %v1806_v11, %v907_v23 }
 0xe74   :  { %v912_v4 = vsel %vm911_vm10, %v1806_v11, %v908_v1 }
 0xe75   :  { %v917_v18 = vsel %vm914_vm11, %v916_v5, %v912_v4 }
 0xe76   :  { %v920_v33 = vmul.f32 %v917_v18, %v2448_v40 }
 0xeb1   :  { %v1120_v17 = vpop.permute.xlu2 %1119 }
 0xeb2   :  { %v1122_v20 = vmul.f32 %v1120_v17, %v1110_v19 }
 0xeb4   :  { %1124 = vrot.lane.b32.xlu2 %v1122_v20, %s2143_s24 }
 0xec1   :  { %v923_v25 = vpop.permute.xlu1 %922 }
 0xec2   :  { %v925_v26 = vmul.f32 %v923_v25, %v917_v18 }
 0xec4   :  { %927 = vrot.lane.b32.xlu0 %v925_v26, %s2143_s24 }
 0xec9   :  { %v1115_v27 = vpop.permute.xlu1 %1114 }
 0xeca   :  { %v1117_v28 = vmul.f32 %v1115_v27, %v1110_v19 }
 0xf0e   :  { %v1125_v29 = vpop.permute.xlu2 %1124 }
 0xf0f   :  { %v1127_v31 = vadd.f32 %v1125_v29, %v1117_v28 }
 0xf11   :  { %1807 = vtanh.f32 %v1127_v31 }
 0xf17   :  { %v1808_v32 = vpop.eup %1807 }
 0xf18   :  { %1130 = vrot.lane.b32.xlu1 %v1808_v32, %s2142_s23 }
 0xf36   :  { %v928_v34 = vpop.permute.xlu0 %927 }
 0xf37   :  { %v2495_v35 = vadd.f32 %v928_v34, %v920_v33 }
 0xf39   :  { %1809 = vtanh.f32 %v2495_v35 }
 0xf3f   :  { %v1810_v36 = vpop.eup %1809 }
 0xf40   :  { %933 = vrot.lane.b32.xlu0 %v1810_v36, %s2142_s23 }
 0xf8a   :  { %v1131_v37 = vpop.permute.xlu1 %1130 }
 0xf8b   :  { %v1133_v38 = vmul.f32 %v1131_v37, %v1110_v19 }
 0xf8d   :  { %1135 = vrot.lane.b32.xlu0 %v1133_v38, %s2143_s24 }
 0xfb2   :  { %v934_v39 = vpop.permute.xlu0 %933 }
 0xfb3   :  { %v936_v41 = vmul.f32 %v934_v39, %v917_v18 }
 0xfb5   :  { %938 = vrot.lane.b32.xlu2 %v936_v41, %s2143_s24 }
 0xfff   :  { %v1136_v40 = vpop.permute.xlu0 %1135 }
0x100f   :  { %v939_v42 = vpop.permute.xlu2 %938 }
0x1010   :  { %1700 = vmatmul.msk.f32.vlgmr.msrb.gmra.mxu2 %vm493_vm5, %v939_v42  ;;  %1708 = vmatmul.msk.f32.gmra.mxu3 %vm493_vm5, %v939_v42  ;;  %v1050_v42 = vpop.f32.mrf.mxu3 }
0x1011   :  { %1277 = vmatpush.msrb.mxu2 %v2453_v44 }
0x1013   :  { %1278 = vmatpush.msrb.mxu2 %v2455_v45 }
0x1015   :  { %1279 = vmatpush.msrb.mxu2 %v2459_v9 }
0x1017   :  { %1280 = vmatpush.msrb.mxu2 %v2463_v46 }
0x1018   :  { %1712 = vmatmul.msk.f32.vlgmr.msra.gmra.mxu2 %vm493_vm5, %v1136_v40  ;;  %v1051_v40 = vadd.f32 %v2485_v52, %v1050_v42 }
0x1019   :  { %1403 = vmatpush.msra.mxu2 %v2453_v44 }
0x101b   :  { %1404 = vmatpush.msra.mxu2 %v2455_v45 }
0x101d   :  { %1405 = vmatpush.msra.mxu2 %v2459_v9 }
0x101f   :  { %1406 = vmatpush.msra.mxu2 %v2463_v46 }
0x1093   :  { %v2512_v43 = vpop.f32.mrf.mxu2 }
0x109b   :  { %v1156_v49 = vpop.f32.mrf.mxu2 }
0x109c   :  { %v1159_v50 = vadd.f32 %v1156_v49, %v1045_v48 }
0x109e   :  { %1811 = vtanh.f32 %v1159_v50  ;;  %v1713_v53 = vmul.f32 -1.442695, %v1159_v50 }
0x10a0   :  { %1813 = vpow2.f32 %v1713_v53 }
0x10a4   :  { %v1812_v51 = vpop.eup %1811 }
0x10a5   :  { %1182 = vrot.lane.b32.xlu1 %v1812_v51, %s2142_s23 }
0x10a6   :  { %v1814_v54 = vpop.eup %1813 }
0x10a7   :  { %v1163_v56 = vadd.f32 1.0, %v1814_v54 }
0x10a9   :  { %1815 = vrcp.f32 %v1163_v56  ;;  %v1175_v55 = vand.u32 2147483648, %v1163_v56  ;;  %vm1169_vm13 = vweird.f32 %v1163_v56  ;;  %v1173_v61 = vand.u32 2147483647, %v1163_v56 }
0x10ab   :  { %v1176_v63 = vor.u32 1.1754944e-38, %v1175_v55  ;;  %vm1174_vm0 = vcmp.eq.f32.partialorder %v1173_v61, 8.507059e+37 }
0x10af   :  { %v1816_v57 = vpop.eup %1815 }
0x10b0   :  { %v1165_v58 = vmul.f32 %v1816_v57, %v1163_v56  ;;  %vm1170_vm12 = vweird.f32 %v1816_v57 }
0x10b1   :  { %vm1171_vm14 = vmor %vm1169_vm13, %vm1170_vm12 }
0x10b2   :  { %v1166_v59 = vsub.f32 1.0, %v1165_v58 }
0x10b4   :  { %v1167_v60 = vmul.f32 %v1816_v57, %v1166_v59 }
0x10b6   :  { %v1168_v30 = vadd.f32 %v1816_v57, %v1167_v60 }
0x10b8   :  { %v1172_v62 = vsel %vm1171_vm14, %v1816_v57, %v1168_v30 }
0x10b9   :  { %v1177_v2 = vsel %vm1174_vm0, %v1176_v63, %v1172_v62 }
0x10ba   :  { %v1180_v7 = vmul.f32 %v1177_v2, %v1127_v31 }
0x1117   :  { %v1183_v0 = vpop.permute.xlu1 %1182 }
0x1118   :  { %v1185_v6 = vmul.f32 %v1183_v0, %v1177_v2 }
0x111a   :  { %1187 = vrot.lane.b32.xlu2 %v1185_v6, %s2143_s24 }
0x1174   :  { %v1188_v8 = vpop.permute.xlu2 %1187 }
0x1175   :  { %v1190_v10 = vadd.f32 %v1188_v8, %v1180_v7  ;;  %v1053_v8 = vpop.f32.mrf.mxu3 }
0x1177   :  { %1817 = vtanh.f32 %v1190_v10 }
0x117d   :  { %v1818_v11 = vpop.eup %1817 }
0x117e   :  { %1193 = vrot.lane.b32.xlu0 %v1818_v11, %s2142_s23 }
0x11f0   :  { %v1194_v12 = vpop.permute.xlu0 %1193 }
0x11f1   :  { %v1196_v13 = vmul.f32 %v1194_v12, %v1177_v2 }
0x11f3   :  { %1198 = vrot.lane.b32.xlu1 %v1196_v13, %s2143_s24 }
0x1265   :  { %v1199_v14 = vpop.permute.xlu1 %1198 }
0x1266   :  { %1714 = vmatmul.msk.f32.vlgmr.msra.gmra.mxu1 %vm493_vm5, %v1199_v14 }
0x1267   :  { %1466 = vmatpush.msra.mxu1 %v2453_v44 }
0x1269   :  { %1467 = vmatpush.msra.mxu1 %v2455_v45 }
0x126b   :  { %1468 = vmatpush.msra.mxu1 %v2459_v9 }
0x126d   :  { %1469 = vmatpush.msra.mxu1 %v2463_v46 }
0x12e3   :  { %v1219_v17 = vpop.f32.mrf.mxu1 }
0x12e4   :  { %v1222_v19 = vadd.f32 %v1219_v17, %v1048_v16 }
0x12e6   :  { %1819 = vtanh.f32 %v1222_v19  ;;  %v1715_v21 = vmul.f32 -1.442695, %v1222_v19 }
0x12e8   :  { %1821 = vpow2.f32 %v1715_v21 }
0x12ec   :  { %v1820_v20 = vpop.eup %1819 }
0x12ed   :  { %1245 = vrot.lane.b32.xlu2 %v1820_v20, %s2142_s23 }
0x12ee   :  { %v1822_v23 = vpop.eup %1821 }
0x12ef   :  { %v1226_v1 = vadd.f32 1.0, %v1822_v23 }
0x12f1   :  { %1823 = vrcp.f32 %v1226_v1  ;;  %v1238_v18 = vand.u32 2147483648, %v1226_v1  ;;  %vm1232_vm2 = vweird.f32 %v1226_v1  ;;  %v1236_v26 = vand.u32 2147483647, %v1226_v1 }
0x12f3   :  { %v1239_v28 = vor.u32 1.1754944e-38, %v1238_v18  ;;  %vm1237_vm4 = vcmp.eq.f32.partialorder %v1236_v26, 8.507059e+37 }
0x12f7   :  { %v1824_v3 = vpop.eup %1823 }
0x12f8   :  { %v1228_v24 = vmul.f32 %v1824_v3, %v1226_v1  ;;  %vm1233_vm1 = vweird.f32 %v1824_v3 }
0x12f9   :  { %vm1234_vm3 = vmor %vm1232_vm2, %vm1233_vm1 }
0x12fa   :  { %v1229_v4 = vsub.f32 1.0, %v1228_v24 }
0x12fc   :  { %v1230_v5 = vmul.f32 %v1824_v3, %v1229_v4 }
0x12fe   :  { %v1231_v25 = vadd.f32 %v1824_v3, %v1230_v5 }
0x1300   :  { %v1235_v27 = vsel %vm1234_vm3, %v1824_v3, %v1231_v25 }
0x1301   :  { %v1240_v31 = vsel %vm1237_vm4, %v1239_v28, %v1235_v27 }
0x1302   :  { %v1243_v33 = vmul.f32 %v1240_v31, %v1190_v10  ;;  %v1054_v10 = vadd.f32 %v2485_v52, %v1053_v8 }
0x1347   :  { %v1246_v29 = vpop.permute.xlu2 %1245 }
0x1348   :  { %v1248_v32 = vmul.f32 %v1246_v29, %v1240_v31 }
0x134a   :  { %1250 = vrot.lane.b32.xlu0 %v1248_v32, %s2143_s24 }
0x13bc   :  { %v1251_v34 = vpop.permute.xlu0 %1250 }
0x13bd   :  { %v1253_v36 = vadd.f32 %v1251_v34, %v1243_v33  ;;  %v1056_v34 = vpop.f32.mrf.mxu3 }
0x13bf   :  { %1825 = vtanh.f32 %v1253_v36 }
0x13c5   :  { %v1826_v37 = vpop.eup %1825 }
0x13c6   :  { %1256 = vrot.lane.b32.xlu1 %v1826_v37, %s2142_s23 }
0x1438   :  { %v1257_v38 = vpop.permute.xlu1 %1256 }
0x1439   :  { %v1259_v39 = vmul.f32 %v1257_v38, %v1240_v31 }
0x143b   :  { %1261 = vrot.lane.b32.xlu2 %v1259_v39, %s2143_s24 }
0x1495   :  { %v1262_v41 = vpop.permute.xlu2 %1261 }
0x1496   :  { %1716 = vmatmul.msk.f32.vlgmr.msrb.gmra.mxu2 %vm493_vm5, %v1262_v41 }
0x1497   :  { %1529 = vmatpush.msrb.mxu2 %v2453_v44 }
0x1499   :  { %1530 = vmatpush.msrb.mxu2 %v2455_v45 }
0x149b   :  { %1531 = vmatpush.msrb.mxu2 %v2459_v9 }
0x149d   :  { %1532 = vmatpush.msrb.mxu2 %v2463_v46 }
0x1519   :  { %v1282_v47 = vpop.f32.mrf.mxu2 }
0x151a   :  { %v1285_v48 = vadd.f32 %v1282_v47, %v1051_v40 }
0x151c   :  { %1827 = vtanh.f32 %v1285_v48  ;;  %v1717_v50 = vmul.f32 -1.442695, %v1285_v48 }
0x151e   :  { %1829 = vpow2.f32 %v1717_v50 }
0x1522   :  { %v1828_v49 = vpop.eup %1827 }
0x1523   :  { %1308 = vrot.lane.b32.xlu0 %v1828_v49, %s2142_s23 }
0x1524   :  { %v1830_v51 = vpop.eup %1829 }
0x1525   :  { %v1289_v53 = vadd.f32 1.0, %v1830_v51 }
0x1527   :  { %1831 = vrcp.f32 %v1289_v53  ;;  %v1301_v46 = vand.u32 2147483648, %v1289_v53  ;;  %vm1295_vm7 = vweird.f32 %v1289_v53  ;;  %v1299_v57 = vand.u32 2147483647, %v1289_v53 }
0x1529   :  { %v1302_v59 = vor.u32 1.1754944e-38, %v1301_v46  ;;  %vm1300_vm15 = vcmp.eq.f32.partialorder %v1299_v57, 8.507059e+37 }
0x152d   :  { %v1832_v44 = vpop.eup %1831 }
0x152e   :  { %v1291_v45 = vmul.f32 %v1832_v44, %v1289_v53  ;;  %vm1296_vm6 = vweird.f32 %v1832_v44 }
0x152f   :  { %vm1297_vm8 = vmor %vm1295_vm7, %vm1296_vm6 }
0x1530   :  { %v1292_v54 = vsub.f32 1.0, %v1291_v45 }
0x1532   :  { %v1293_v9 = vmul.f32 %v1832_v44, %v1292_v54  ;;  %v1877_v54 = vld [vmem:[%s2614_s5] ss:$0 sm:$0xff]  ;;  %s2144_s5 = smov 96  }
0x1534   :  { %v1294_v56 = vadd.f32 %v1832_v44, %v1293_v9  ;;  %v489_v9 = vadd.f32 %v1877_v54, %v2442_v22 }
0x1536   :  { %v1298_v58 = vsel %vm1297_vm8, %v1832_v44, %v1294_v56  ;;  %v962_v46 = vadd.f32 %v2512_v43, %v489_v9 }
0x1537   :  { %v1303_v30 = vsel %vm1300_vm15, %v1302_v59, %v1298_v58 }
0x1538   :  { %v1306_v61 = vmul.f32 %v1303_v30, %v1253_v36  ;;  %v1057_v36 = vadd.f32 %v2485_v52, %v1056_v34 }
0x1595   :  { %v1309_v60 = vpop.permute.xlu0 %1308 }
0x1596   :  { %v1311_v55 = vmul.f32 %v1309_v60, %v1303_v30 }
0x1598   :  { %1313 = vrot.lane.b32.xlu1 %v1311_v55, %s2143_s24 }
0x160a   :  { %v1314_v62 = vpop.permute.xlu1 %1313 }
0x160b   :  { %v1316_v63 = vadd.f32 %v1314_v62, %v1306_v61  ;;  %v1701_v62 = vmul.f32 -1.442695, %v962_v46 }
0x160d   :  { %1833 = vtanh.f32 %v1316_v63 }
0x1613   :  { %v1834_v0 = vpop.eup %1833 }
0x1614   :  { %1319 = vrot.lane.b32.xlu2 %v1834_v0, %s2142_s23 }
0x166e   :  { %v1320_v2 = vpop.permute.xlu2 %1319 }
0x166f   :  { %v1322_v6 = vmul.f32 %v1320_v2, %v1303_v30 }
0x1671   :  { %1324 = vrot.lane.b32.xlu0 %v1322_v6, %s2143_s24 }
0x16e3   :  { %v1325_v7 = vpop.permute.xlu0 %1324 }
0x16e4   :  { %1718 = vmatmul.msk.f32.vlgmr.msrb.gmra.mxu1 %vm493_vm5, %v1325_v7 }
0x1761   :  { %v1345_v11 = vpop.f32.mrf.mxu1 }
0x1762   :  { %v1348_v12 = vadd.f32 %v1345_v11, %v1054_v10 }
0x1764   :  { %1835 = vtanh.f32 %v1348_v12  ;;  %v1719_v14 = vmul.f32 -1.442695, %v1348_v12 }
0x1766   :  { %1837 = vpow2.f32 %v1719_v14 }
0x176a   :  { %v1836_v13 = vpop.eup %1835 }
0x176b   :  { %1371 = vrot.lane.b32.xlu1 %v1836_v13, %s2142_s23 }
0x176c   :  { %v1838_v15 = vpop.eup %1837 }
0x176d   :  { %v1352_v16 = vadd.f32 1.0, %v1838_v15 }
0x176f   :  { %1839 = vrcp.f32 %v1352_v16  ;;  %v1364_v1 = vand.u32 2147483648, %v1352_v16  ;;  %vm1358_vm10 = vweird.f32 %v1352_v16  ;;  %v1362_v3 = vand.u32 2147483647, %v1352_v16 }
0x1771   :  { %v1365_v4 = vor.u32 1.1754944e-38, %v1364_v1  ;;  %vm1363_vm12 = vcmp.eq.f32.partialorder %v1362_v3, 8.507059e+37 }
0x1775   :  { %v1840_v17 = vpop.eup %1839 }
0x1776   :  { %v1354_v19 = vmul.f32 %v1840_v17, %v1352_v16  ;;  %vm1359_vm9 = vweird.f32 %v1840_v17 }
0x1777   :  { %vm1360_vm11 = vmor %vm1358_vm10, %vm1359_vm9 }
0x1778   :  { %v1355_v20 = vsub.f32 1.0, %v1354_v19 }
0x177a   :  { %v1356_v21 = vmul.f32 %v1840_v17, %v1355_v20 }
0x177c   :  { %v1357_v23 = vadd.f32 %v1840_v17, %v1356_v21  ;;  %v1059_v21 = vpop.f32.mrf.mxu3 }
0x177e   :  { %v1361_v24 = vsel %vm1360_vm11, %v1840_v17, %v1357_v23  ;;  %v1060_v23 = vadd.f32 %v2485_v52, %v1059_v21 }
0x177f   :  { %v1366_v25 = vsel %vm1363_vm12, %v1365_v4, %v1361_v24 }
0x1780   :  { %v1369_v26 = vmul.f32 %v1366_v25, %v1316_v63 }
0x17dd   :  { %v1372_v5 = vpop.permute.xlu1 %1371 }
0x17de   :  { %v1374_v18 = vmul.f32 %v1372_v5, %v1366_v25 }
0x17e0   :  { %1376 = vrot.lane.b32.xlu2 %v1374_v18, %s2143_s24 }
0x183a   :  { %v1377_v27 = vpop.permute.xlu2 %1376 }
0x183b   :  { %v1379_v28 = vadd.f32 %v1377_v27, %v1369_v26 }
0x183d   :  { %1841 = vtanh.f32 %v1379_v28 }
0x1843   :  { %v1842_v29 = vpop.eup %1841 }
0x1844   :  { %1382 = vrot.lane.b32.xlu0 %v1842_v29, %s2142_s23 }
0x18b6   :  { %v1383_v31 = vpop.permute.xlu0 %1382 }
0x18b7   :  { %v1385_v32 = vmul.f32 %v1383_v31, %v1366_v25 }
0x18b9   :  { %1387 = vrot.lane.b32.xlu1 %v1385_v32, %s2143_s24 }
0x192b   :  { %v1388_v33 = vpop.permute.xlu1 %1387 }
0x192c   :  { %1720 = vmatmul.msk.f32.vlgmr.msra.gmra.mxu2 %vm493_vm5, %v1388_v33 }
0x19af   :  { %v1408_v37 = vpop.f32.mrf.mxu2 }
0x19b0   :  { %v1411_v38 = vadd.f32 %v1408_v37, %v1057_v36 }
0x19b2   :  { %1843 = vtanh.f32 %v1411_v38  ;;  %v1721_v41 = vmul.f32 -1.442695, %v1411_v38 }
0x19b4   :  { %1845 = vpow2.f32 %v1721_v41 }
0x19b8   :  { %v1844_v39 = vpop.eup %1843 }
0x19b9   :  { %1434 = vrot.lane.b32.xlu2 %v1844_v39, %s2142_s23 }
0x19ba   :  { %v1846_v42 = vpop.eup %1845 }
0x19bb   :  { %v1415_v40 = vadd.f32 1.0, %v1846_v42 }
0x19bd   :  { %1847 = vrcp.f32 %v1415_v40  ;;  %v1427_v53 = vand.u32 2147483648, %v1415_v40  ;;  %vm1421_vm14 = vweird.f32 %v1415_v40  ;;  %v1425_v44 = vand.u32 2147483647, %v1415_v40 }
0x19be   :  { %1849 = vtanh.f32 %v962_v46 }
0x19bf   :  { %v1428_v56 = vor.u32 1.1754944e-38, %v1427_v53  ;;  %vm1426_vm1 = vcmp.eq.f32.partialorder %v1425_v44, 8.507059e+37 }
0x19c3   :  { %v1848_v47 = vpop.eup %1847 }
0x19c4   :  { %v1417_v48 = vmul.f32 %v1848_v47, %v1415_v40  ;;  %vm1422_vm13 = vweird.f32 %v1848_v47  ;;  %v1850_v60 = vpop.eup %1849 }
0x19c5   :  { %vm1423_vm0 = vmor %vm1421_vm14, %vm1422_vm13  ;;  %vm1631_vm14 = vcmask 7168  }
0x19c6   :  { %v1418_v49 = vsub.f32 1.0, %v1417_v48 }
0x19c8   :  { %v1419_v50 = vmul.f32 %v1848_v47, %v1418_v49 }
0x19ca   :  { %v1420_v51 = vadd.f32 %v1848_v47, %v1419_v50 }
0x19cc   :  { %v1424_v45 = vsel %vm1423_vm0, %v1848_v47, %v1420_v51 }
0x19cd   :  { %v1429_v58 = vsel %vm1426_vm1, %v1428_v56, %v1424_v45 }
0x19ce   :  { %v1432_v30 = vmul.f32 %v1429_v58, %v1379_v28 }
0x1a13   :  { %v1435_v57 = vpop.permute.xlu2 %1434 }
0x1a14   :  { %v1437_v59 = vmul.f32 %v1435_v57, %v1429_v58 }
0x1a16   :  { %1439 = vrot.lane.b32.xlu0 %v1437_v59, %s2143_s24 }
0x1a1e   :  { %985 = vrot.lane.b32.xlu0 %v1850_v60, %s2142_s23 }
0x1a88   :  { %v1440_v55 = vpop.permute.xlu0 %1439 }
0x1a89   :  { %v2555_v61 = vadd.f32 %v1440_v55, %v1432_v30 }
0x1a8b   :  { %1851 = vtanh.f32 %v2555_v61 }
0x1a8c   :  { %1853 = vpow2.f32 %v1701_v62 }
0x1a90   :  { %v986_v16 = vpop.permute.xlu0 %985 }
0x1a91   :  { %v1852_v22 = vpop.eup %1851 }
0x1a92   :  { %1445 = vrot.lane.b32.xlu1 %v1852_v22, %s2142_s23  ;;  %v1854_v43 = vpop.eup %1853 }
0x1a93   :  { %v966_v63 = vadd.f32 1.0, %v1854_v43 }
0x1a95   :  { %1855 = vrcp.f32 %v966_v63  ;;  %v978_v12 = vand.u32 2147483648, %v966_v63  ;;  %vm972_vm3 = vweird.f32 %v966_v63  ;;  %v976_v13 = vand.u32 2147483647, %v966_v63 }
0x1a97   :  { %v979_v15 = vor.u32 1.1754944e-38, %v978_v12  ;;  %vm977_vm6 = vcmp.eq.f32.partialorder %v976_v13, 8.507059e+37 }
0x1a9b   :  { %v1856_v0 = vpop.eup %1855 }
0x1a9c   :  { %v968_v2 = vmul.f32 %v1856_v0, %v966_v63  ;;  %vm973_vm2 = vweird.f32 %v1856_v0 }
0x1a9d   :  { %vm974_vm4 = vmor %vm972_vm3, %vm973_vm2 }
0x1a9e   :  { %v969_v6 = vsub.f32 1.0, %v968_v2 }
0x1aa0   :  { %v970_v7 = vmul.f32 %v1856_v0, %v969_v6 }
0x1aa2   :  { %v971_v10 = vadd.f32 %v1856_v0, %v970_v7 }
0x1aa4   :  { %v975_v14 = vsel %vm974_vm4, %v1856_v0, %v971_v10 }
0x1aa5   :  { %v980_v17 = vsel %vm977_vm6, %v979_v15, %v975_v14  ;;  %v1590_v14 = vld [vmem:[#allocation15 + $0x18] sm:$0xff]  ;;  %v1589_v15 = vld [vmem:[#allocation15 + $0x10] sm:$0xff] }
0x1aa6   :  { %v988_v19 = vmul.f32 %v986_v16, %v980_v17  ;;  %v983_v4 = vmul.f32 %v980_v17, %v2495_v35  ;;  %1609 = vmatpush.msrb.mxu1 %v1590_v14  ;;  %v1588_v16 = vld [vmem:[#allocation15 + $0x8] sm:$0xff] }
0x1aa8   :  { %1610 = vmatpush.msrb.mxu1 %v1589_v15 }
0x1aaa   :  { %1611 = vmatpush.msrb.mxu1 %v1588_v16 }
0x1b04   :  { %v1446_v8 = vpop.permute.xlu1 %1445 }
0x1b05   :  { %v1448_v11 = vmul.f32 %v1446_v8, %v1429_v58 }
0x1b07   :  { %1450 = vrot.lane.b32.xlu2 %v1448_v11, %s2143_s24 }
0x1b0f   :  { %990 = vrot.lane.b32.xlu2 %v988_v19, %s2143_s24 }
0x1b61   :  { %v1451_v20 = vpop.permute.xlu2 %1450 }
0x1b62   :  { %1722 = vmatmul.msk.f32.vlgmr.msra.gmra.mxu1 %vm493_vm5, %v1451_v20 }
0x1b69   :  { %v991_v24 = vpop.permute.xlu2 %990 }
0x1b6a   :  { %v2564_v5 = vadd.f32 %v991_v24, %v983_v4 }
0x1bdf   :  { %v1471_v1 = vpop.f32.mrf.mxu1 }
0x1be0   :  { %v1474_v3 = vadd.f32 %v1471_v1, %v1060_v23 }
0x1be2   :  { %1857 = vtanh.f32 %v1474_v3  ;;  %v1723_v26 = vmul.f32 -1.442695, %v1474_v3  ;;  %v1744_v3 = vld [vmem:[%s2619_s10] ss:$0 sm:$0xff]  ;;  %s1654_s10 = sshll.u32 %s2624_s15, 4  ;;  %s1655_s10 = int_to_ptr.hbm [resolvable:$true] %s1654_s10 }
0x1be3   :  { %1859 = vtanh.f32 %v2564_v5 }
0x1be4   :  { %1861 = vpow2.f32 %v1723_v26 }
0x1be8   :  { %v1858_v25 = vpop.eup %1857 }
0x1be9   :  { %1497 = vrot.lane.b32.xlu1 %v1858_v25, %s2142_s23  ;;  %v1860_v18 = vpop.eup %1859 }
0x1bea   :  { %v1862_v27 = vpop.eup %1861 }
0x1beb   :  { %v1478_v28 = vadd.f32 1.0, %v1862_v27  ;;  %v1746_v27 = vld [vmem:[#allocation2] ss:$0 sm:$0xff] }
0x1bed   :  { %1863 = vrcp.f32 %v1478_v28  ;;  %v1490_v34 = vand.u32 2147483648, %v1478_v28  ;;  %vm1484_vm8 = vweird.f32 %v1478_v28  ;;  %v1488_v36 = vand.u32 2147483647, %v1478_v28 }
0x1bef   :  { %v1491_v38 = vor.u32 1.1754944e-38, %v1490_v34  ;;  %vm1489_vm9 = vcmp.eq.f32.partialorder %v1488_v36, 8.507059e+37 }
0x1bf1   :  { %996 = vrot.lane.b32.xlu1 %v1860_v18, %s2142_s23 }
0x1bf3   :  { %v1864_v29 = vpop.eup %1863 }
0x1bf4   :  { %v1480_v31 = vmul.f32 %v1864_v29, %v1478_v28  ;;  %vm1485_vm7 = vweird.f32 %v1864_v29 }
0x1bf5   :  { %vm1486_vm15 = vmor %vm1484_vm8, %vm1485_vm7 }
0x1bf6   :  { %v1481_v32 = vsub.f32 1.0, %v1480_v31 }
0x1bf8   :  { %v1482_v33 = vmul.f32 %v1864_v29, %v1481_v32 }
0x1bfa   :  { %v1483_v35 = vadd.f32 %v1864_v29, %v1482_v33 }
0x1bfc   :  { %v1487_v37 = vsel %vm1486_vm15, %v1864_v29, %v1483_v35 }
0x1bfd   :  { %v1492_v41 = vsel %vm1489_vm9, %v1491_v38, %v1487_v37 }
0x1bfe   :  { %v1495_v48 = vmul.f32 %v1492_v41, %v2555_v61 }
0x1c5b   :  { %v1498_v39 = vpop.permute.xlu1 %1497 }
0x1c5c   :  { %v1500_v42 = vmul.f32 %v1498_v39, %v1492_v41 }
0x1c5e   :  { %1502 = vrot.lane.b32.xlu0 %v1500_v42, %s2143_s24 }
0x1c63   :  { %v997_v40 = vpop.permute.xlu1 %996 }
0x1c64   :  { %v999_v47 = vmul.f32 %v997_v40, %v980_v17  ;;  %v1587_v17 = vld [vmem:[#allocation15] sm:$0xff] }
0x1c65   :  { %1612 = vmatpush.msrb.mxu1 %v1587_v17 }
0x1c66   :  { %1001 = vrot.lane.b32.xlu0 %v999_v47, %s2143_s24 }
0x1cd0   :  { %v1503_v49 = vpop.permute.xlu0 %1502 }
0x1cd1   :  { %v1505_v50 = vadd.f32 %v1503_v49, %v1495_v48 }
0x1cd3   :  { %1865 = vtanh.f32 %v1505_v50 }
0x1cd8   :  { %v1002_v51 = vpop.permute.xlu0 %1001 }
0x1cd9   :  { %v1866_v53 = vpop.eup %1865  ;;  %1004 = vst.msk [vmem:[#allocation17] sm:$0xff] %vm493_vm5, %v1002_v51  ;;  %1709 = vmatmul.msk.f32.gmra.mxu3 %vm493_vm5, %v1002_v51 }
0x1cda   :  { %1508 = vrot.lane.b32.xlu2 %v1866_v53, %s2142_s23 }
0x1d34   :  { %v1509_v44 = vpop.permute.xlu2 %1508 }
0x1d35   :  { %v1511_v45 = vmul.f32 %v1509_v44, %v1492_v41 }
0x1d37   :  { %1513 = vrot.lane.b32.xlu1 %v1511_v45, %s2143_s24 }
0x1d5c   :  { %v1062_v9 = vpop.f32.mrf.mxu3 }
0x1d5d   :  { %v1063_v56 = vadd.f32 %v2485_v52, %v1062_v9 }
0x1da9   :  { %v1514_v54 = vpop.permute.xlu1 %1513 }
0x1daa   :  { %1724 = vmatmul.msk.f32.vlgmr.msrb.gmra.mxu2 %vm493_vm5, %v1514_v54 }
0x1e2d   :  { %v1534_v46 = vpop.f32.mrf.mxu2 }
0x1e2e   :  { %v1537_v57 = vadd.f32 %v1534_v46, %v1063_v56 }
0x1e30   :  { %1867 = vtanh.f32 %v1537_v57  ;;  %v1725_v59 = vmul.f32 -1.442695, %v1537_v57 }
0x1e32   :  { %1869 = vpow2.f32 %v1725_v59 }
0x1e36   :  { %v1868_v58 = vpop.eup %1867 }
0x1e37   :  { %1560 = vrot.lane.b32.xlu2 %v1868_v58, %s2142_s23 }
0x1e38   :  { %v1870_v60 = vpop.eup %1869 }
0x1e39   :  { %v1541_v30 = vadd.f32 1.0, %v1870_v60 }
0x1e3b   :  { %1871 = vrcp.f32 %v1541_v30  ;;  %v1553_v63 = vand.u32 2147483648, %v1541_v30  ;;  %vm1547_vm11 = vweird.f32 %v1541_v30  ;;  %v1551_v52 = vand.u32 2147483647, %v1541_v30 }
0x1e3d   :  { %v1554_v2 = vor.u32 1.1754944e-38, %v1553_v63  ;;  %vm1552_vm13 = vcmp.eq.f32.partialorder %v1551_v52, 8.507059e+37 }
0x1e41   :  { %v1872_v55 = vpop.eup %1871 }
0x1e42   :  { %v1543_v61 = vmul.f32 %v1872_v55, %v1541_v30  ;;  %vm1548_vm10 = vweird.f32 %v1872_v55 }
0x1e43   :  { %vm1549_vm12 = vmor %vm1547_vm11, %vm1548_vm10 }
0x1e44   :  { %v1544_v22 = vsub.f32 1.0, %v1543_v61 }
0x1e46   :  { %v1545_v62 = vmul.f32 %v1872_v55, %v1544_v22 }
0x1e48   :  { %v1546_v43 = vadd.f32 %v1872_v55, %v1545_v62 }
0x1e4a   :  { %v1550_v0 = vsel %vm1549_vm12, %v1872_v55, %v1546_v43 }
0x1e4b   :  { %v1555_v7 = vsel %vm1552_vm13, %v1554_v2, %v1550_v0 }
0x1e4c   :  { %v1558_v10 = vmul.f32 %v1555_v7, %v1505_v50 }
0x1e91   :  { %v1561_v6 = vpop.permute.xlu2 %1560 }
0x1e92   :  { %v1563_v8 = vmul.f32 %v1561_v6, %v1555_v7 }
0x1e94   :  { %1565 = vrot.lane.b32.xlu0 %v1563_v8, %s2143_s24 }
0x1f06   :  { %v1566_v11 = vpop.permute.xlu0 %1565 }
0x1f07   :  { %v1568_v12 = vadd.f32 %v1566_v11, %v1558_v10 }
0x1f09   :  { %1873 = vtanh.f32 %v1568_v12 }
0x1f0f   :  { %v1874_v13 = vpop.eup %1873 }
0x1f10   :  { %1571 = vrot.lane.b32.xlu1 %v1874_v13, %s2142_s23 }
0x1f18   :  { %1006 = vrot.lane.b32.xlu1 %v2564_v5, %s2144_s5  ;;  %v1745_v5 = vld [vmem:[%s2620_s11] ss:$0 sm:$0xff] }
0x1f82   :  { %v1572_v19 = vpop.permute.xlu1 %1571 }
0x1f83   :  { %v1574_v20 = vmul.f32 %v1572_v19, %v1555_v7 }
0x1f85   :  { %1576 = vrot.lane.b32.xlu2 %v1574_v20, %s2143_s24 }
0x1f8a   :  { %v1007_v21 = vpop.permute.xlu1 %1006 }
0x1f8b   :  { %1009 = vst.msk [vmem:[#allocation18] sm:$0xff] %vm493_vm5, %v1007_v21 }
0x1f8d   :  { %1582 = vrot.lane.b32.xlu2 %v1568_v12, %s2144_s5 }
0x1fdf   :  { %v1577_v23 = vpop.permute.xlu2 %1576 }
0x1fe0   :  { %1580 = vst.msk [vmem:[#allocation17 + $0x8] sm:$0xff] %vm493_vm5, %v1577_v23  ;;  %1726 = vmatmul.msk.f32.vlgmr.msrb.gmra.mxu1 %vm493_vm5, %v1577_v23 }
0x1fe1   :  { %1647 = dma.vmem_to_hbm [thread:$0]  %s1640_s16, 256, %s1642_s1, [#allocation5], %s2133_s27, %s2133_s27, %s2134_s28  }
0x1fe7   :  { %v1583_v1 = vpop.permute.xlu2 %1582 }
0x1fe8   :  { %1586 = vst.msk [vmem:[#allocation18 + $0x8] sm:$0xff] %vm493_vm5, %v1583_v1 }
0x1fe9   :  { %1660 = dma.vmem_to_hbm [thread:$0]  %s1653_s4, 256, %s1655_s10, [#allocation19], %s2133_s27, %s2133_s27, %s2134_s28  }
0x205d   :  { %v1614_v24 = vpop.f32.mrf.mxu1 }
0x205e   :  { %v1615_v4 = vadd.f32 %v1744_v3, %v1614_v24 }
0x2060   :  { %1875 = vtanh.f32 %v1615_v4 }
0x2066   :  { %v1876_v25 = vpop.eup %1875 }
0x2067   :  { %v1622_v18 = vmul.f32 %v1876_v25, %v1745_v5 }
0x2069   :  { %v1623_v26 = vsel %vm493_vm5, %v1622_v18, 0.0 }
0x206a   :  { %1624 = vadd.xlane.f32.xlu0 %v1623_v26 }
0x20dd   :  { %v1625_v28 = vpop.xlane.xlu0 %1624 }
0x20de   :  { %v1630_v29 = vadd.f32 %v1746_v27, %v1625_v28 }
0x20e0   :  { %1632 = vst.msk [vmem:[%s2622_s13] sm:$0xff] %vm1631_vm14, %v1630_v29 }
0x20e1   :  { %2128 = dma.done.wait [#allocation5], 256  }
0x20e2   :  { %2129 = vsyncadd [#allocation5], 4294967040 }
0x20e3   :  { %2130 = dma.done.wait [#allocation19], 256  }
0x20e4   :  { %2131 = vsyncadd [#allocation19], 4294967040 }
0x20e5   :  { %1671 = vsyncpa [#allocation4], 1 }
0x20e6   :  { %1672 = vsyncpa [#allocation7], 1 }
0x20e7   :  { %1673 = vsyncpa [#allocation10], 1 }
0x20e8   :  { %1674 = vsyncpa [#allocation13], 1 }
0x20e9   :  { %1675 = vsyncpa [#allocation16], 1 }
0x20ea   :  { %1676 = vsyncpa [#allocation5], 1 }
0x20eb   :  { %1677 = vsyncpa [#allocation19], 1 }

</bundles_post_ra>
